<compile_context>
chip_gen: v7x
topology: tpu7x:2x2x1
jax: 0.10.0
libtpu: 0.0.40
codegen_flags: <defaults>
</compile_context>

<pallas_src>
import jax
import jax.numpy as jnp
from jax.experimental import pallas as pl
from jax.experimental.pallas import tpu as pltpu

_LANE = 128
_VMEM_LIMIT = 32 * 1024 * 1024  # conservative: fits default scoped VMEM on v6e/v7x

_CompilerParams = getattr(pltpu, "CompilerParams", None)
if _CompilerParams is None:  # fallback for older jax releases
    _CompilerParams = pltpu.TPUCompilerParams


def _round_up(x, m):
    return ((x + m - 1) // m) * m


def _mosaic_params():
    return _CompilerParams(dimension_semantics=("parallel",),
                           vmem_limit_bytes=_VMEM_LIMIT)


# ----------------------------- Pallas kernels ------------------------------

def _matmul_bn_relu_kernel(x_ref, w_ref, s_ref, b_ref, o_ref):
    """(TILE_M, K) @ (K, Coutp) on the MXU, fused BN(eval) affine + ReLU."""
    acc = jnp.dot(x_ref[...], w_ref[...], preferred_element_type=jnp.float32)
    y = acc * s_ref[...] + b_ref[...]
    o_ref[...] = jnp.maximum(y, 0.0).astype(o_ref.dtype)


def _conv3x3_s2_bn_relu_kernel(x_ref, w_ref, s_ref, b_ref, o_ref):
    """3x3 / stride-2 / pad-1 conv for one image + BN(eval) + ReLU.

    x_ref: (4, Hq, Wq, Cin)   space-to-depth parity planes of the padded input
                              (plane p = 2*(row%2) + (col%2)).
    w_ref: (9, Cin, Coutp)    per-tap weights, tap t = 3*i + j.
    s_ref, b_ref: (1, Coutp)  folded BN scale / bias (f32).
    o_ref: (1, Ho, Wo, Coutp)
    """
    _, ho, wo, coutp = o_ref.shape
    cin = w_ref.shape[1]
    planes = [x_ref[p] for p in range(4)]           # each (Hq, Wq, Cin)
    acc = jnp.zeros((ho * wo, coutp), jnp.float32)
    for i in range(3):
        a, bpar = i // 2, i % 2
        for j in range(3):
            c, dpar = j // 2, j % 2
            win = planes[2 * bpar + dpar][a:a + ho, c:c + wo, :]
            acc = acc + jnp.dot(win.reshape(ho * wo, cin), w_ref[3 * i + j],
                                preferred_element_type=jnp.float32)
    y = jnp.maximum(acc * s_ref[...] + b_ref[...], 0.0)
    o_ref[0] = y.reshape(ho, wo, coutp).astype(o_ref.dtype)


def _pool_cat_conv1x1_bn_relu_kernel(t_ref, b2_ref, wa_ref, wb_ref,
                                     s_ref, b_ref, o_ref):
    """Fused MaxPool(2,2,ceil) + channel-concat + stem3 1x1 conv + BN + ReLU.

    t_ref:  (4, Hp, Wp, Cp)  2x2 pool taps of the stem1 output (one image).
    b2_ref: (1, Hp, Wp, Cp)  stem2b output (one image).
    wa/wb:  (Cp, Coutp)      stem3 weight split along its input channels
                             (pool-branch rows / conv-branch rows).
    """
    _, hp, wp, coutp = o_ref.shape
    cp = wa_ref.shape[0]
    pooled = jnp.maximum(jnp.maximum(t_ref[0], t_ref[1]),
                         jnp.maximum(t_ref[2], t_ref[3]))     # (Hp, Wp, Cp)
    m = hp * wp
    acc = jnp.dot(pooled.reshape(m, cp), wa_ref[...],
                  preferred_element_type=jnp.float32)
    acc = acc + jnp.dot(b2_ref[0].reshape(m, cp), wb_ref[...],
                        preferred_element_type=jnp.float32)
    y = jnp.maximum(acc * s_ref[...] + b_ref[...], 0.0)
    o_ref[0] = y.reshape(hp, wp, coutp).astype(o_ref.dtype)


# ------------------------------ op wrappers --------------------------------

def conv1x1_bn_relu(x_nhwc, w_oihw, scale, bias, *,
                    out_dtype=jnp.bfloat16, tile_m=512):
    """1x1 Conv(bias=False) + BN(eval) + ReLU as an M-tiled, lane-dense matmul."""
    n, h, w, cin_eff = x_nhwc.shape            # cin_eff may be lane-padded
    cout, cin_w = w_oihw.shape[0], w_oihw.shape[1]
    coutp = _round_up(cout, _LANE)

    w2d = jnp.transpose(w_oihw[:, :, 0, 0], (1, 0))                  # (cin, cout)
    w2d = jnp.pad(w2d, ((0, cin_eff - cin_w), (0, coutp - cout))).astype(jnp.bfloat16)
    s2d = jnp.pad(scale, (0, coutp - cout)).reshape(1, coutp).astype(jnp.float32)
    b2d = jnp.pad(bias, (0, coutp - cout)).reshape(1, coutp).astype(jnp.float32)

    m = n * h * w
    tm = min(tile_m, _round_up(m, 8))
    mp = _round_up(m, tm)
    x2d = x_nhwc.reshape(m, cin_eff).astype(jnp.bfloat16)
    x2d = jnp.pad(x2d, ((0, mp - m), (0, 0)))

    out2d = pl.pallas_call(
        _matmul_bn_relu_kernel,
        out_shape=jax.ShapeDtypeStruct((mp, coutp), out_dtype),
        grid=(mp // tm,),
        in_specs=[
            pl.BlockSpec((tm, cin_eff), lambda i: (i, 0)),
            pl.BlockSpec((cin_eff, coutp), lambda i: (0, 0)),
            pl.BlockSpec((1, coutp), lambda i: (0, 0)),
            pl.BlockSpec((1, coutp), lambda i: (0, 0)),
        ],
        out_specs=pl.BlockSpec((tm, coutp), lambda i: (i, 0)),
        compiler_params=_mosaic_params(),
    )(x2d, w2d, s2d, b2d)
    return out2d[:m].reshape(n, h, w, coutp)


def conv3x3_s2_bn_relu(x_nhwc, w_oihw, scale, bias, *, out_dtype=jnp.bfloat16):
    """3x3 Conv(stride=2, pad=1, bias=False) + BN(eval) + ReLU.

    Patch gathering happens inside the kernel from a space-to-depth view of
    the zero-padded input (no 9x im2col slab in HBM); grid is over images.
    # TODO(synk): for very large feature maps, also tile the grid over output
    # row bands instead of holding a whole image in VMEM.
    """
    n, h, w, cin_eff = x_nhwc.shape
    cout, cin_w, kh, kw = w_oihw.shape
    assert (kh, kw) == (3, 3)
    coutp = _round_up(cout, _LANE)
    stride, pad = 2, 1
    ho = (h + 2 * pad - kh) // stride + 1
    wo = (w + 2 * pad - kw) // stride + 1

    hp = _round_up(h + 2 * pad, 2)
    wp = _round_up(w + 2 * pad, 2)
    xp = jnp.pad(x_nhwc.astype(jnp.bfloat16),
                 ((0, 0), (pad, hp - h - pad), (pad, wp - w - pad), (0, 0)))
    hq, wq = hp // 2, wp // 2
    # Space-to-depth: pure re-layout, same element count as the padded input.
    xsd = jnp.stack([xp[:, 0::2, 0::2, :], xp[:, 0::2, 1::2, :],
                     xp[:, 1::2, 0::2, :], xp[:, 1::2, 1::2, :]], axis=1)
    xsd = xsd.reshape(n * 4, hq, wq, cin_eff)

    # OIHW -> (kh, kw, Cin, Cout) -> (9, Cin_eff, Coutp), tap t = 3*i + j.
    w_taps = jnp.transpose(w_oihw, (2, 3, 1, 0)).reshape(9, cin_w, cout)
    w_taps = jnp.pad(w_taps, ((0, 0), (0, cin_eff - cin_w), (0, coutp - cout)))
    w_taps = w_taps.astype(jnp.bfloat16)
    s2d = jnp.pad(scale, (0, coutp - cout)).reshape(1, coutp).astype(jnp.float32)
    b2d = jnp.pad(bias, (0, coutp - cout)).reshape(1, coutp).astype(jnp.float32)

    return pl.pallas_call(
        _conv3x3_s2_bn_relu_kernel,
        out_shape=jax.ShapeDtypeStruct((n, ho, wo, coutp), out_dtype),
        grid=(n,),
        in_specs=[
            pl.BlockSpec((4, hq, wq, cin_eff), lambda i: (i, 0, 0, 0)),
            pl.BlockSpec((9, cin_eff, coutp), lambda i: (0, 0, 0)),
            pl.BlockSpec((1, coutp), lambda i: (0, 0)),
            pl.BlockSpec((1, coutp), lambda i: (0, 0)),
        ],
        out_specs=pl.BlockSpec((1, ho, wo, coutp), lambda i: (i, 0, 0, 0)),
        compiler_params=_mosaic_params(),
    )(xsd, w_taps, s2d, b2d)


def fused_pool_cat_conv1x1_bn_relu(branch1_src, branch2, w_oihw, scale, bias, *,
                                   out_dtype=jnp.float32):
    """MaxPool2d(2,2,ceil) on branch1_src, concat with branch2 along channels,
    then stem3 1x1 Conv + BN + ReLU — all fused in one kernel (split-K)."""
    n, h1, w1, cp = branch1_src.shape
    _, h2, w2, cp2 = branch2.shape
    assert cp == cp2
    cout, cin2 = w_oihw.shape[0], w_oihw.shape[1]
    c1 = cin2 // 2
    coutp = _round_up(cout, _LANE)

    # ceil_mode padding: branch1_src is post-ReLU (>= 0) and its lane padding
    # is exactly 0, so zero-padding the pool borders == ignoring the padding.
    b1p = jnp.pad(branch1_src,
                  ((0, 0), (0, 2 * h2 - h1), (0, 2 * w2 - w1), (0, 0)))
    taps = jnp.stack([b1p[:, 0::2, 0::2, :], b1p[:, 0::2, 1::2, :],
                      b1p[:, 1::2, 0::2, :], b1p[:, 1::2, 1::2, :]], axis=1)
    taps = taps.reshape(n * 4, h2, w2, cp)

    # Split stem3's weight along its input channels: rows 0:c1 act on the
    # pooled branch, rows c1:2*c1 on the conv branch (torch.cat order).
    w2d = jnp.transpose(w_oihw[:, :, 0, 0], (1, 0))                  # (2*c1, cout)
    wa = jnp.pad(w2d[:c1], ((0, cp - c1), (0, coutp - cout))).astype(jnp.bfloat16)
    wb = jnp.pad(w2d[c1:], ((0, cp - c1), (0, coutp - cout))).astype(jnp.bfloat16)
    s2d = jnp.pad(scale, (0, coutp - cout)).reshape(1, coutp).astype(jnp.float32)
    b2d = jnp.pad(bias, (0, coutp - cout)).reshape(1, coutp).astype(jnp.float32)

    out = pl.pallas_call(
        _pool_cat_conv1x1_bn_relu_kernel,
        out_shape=jax.ShapeDtypeStruct((n, h2, w2, coutp), out_dtype),
        grid=(n,),
        in_specs=[
            pl.BlockSpec((4, h2, w2, cp), lambda i: (i, 0, 0, 0)),
            pl.BlockSpec((1, h2, w2, cp), lambda i: (i, 0, 0, 0)),
            pl.BlockSpec((cp, coutp), lambda i: (0, 0)),
            pl.BlockSpec((cp, coutp), lambda i: (0, 0)),
            pl.BlockSpec((1, coutp), lambda i: (0, 0)),
            pl.BlockSpec((1, coutp), lambda i: (0, 0)),
        ],
        out_specs=pl.BlockSpec((1, h2, w2, coutp), lambda i: (i, 0, 0, 0)),
        compiler_params=_mosaic_params(),
    )(taps, branch2, wa, wb, s2d, b2d)
    return out[..., :cout]


# ----------------------------- parameter setup -----------------------------

def init_basic_conv(key, cin, cout, k):
    """Deterministic Conv+BN params; BN folded to eval-mode scale/bias."""
    kw_, kg, kb, km, kv = jax.random.split(key, 5)
    w = 0.1 * jax.random.normal(kw_, (cout, cin, k, k), jnp.float32)
    gamma = 1.0 + 0.1 * jax.random.normal(kg, (cout,), jnp.float32)
    beta = 0.1 * jax.random.normal(kb, (cout,), jnp.float32)
    running_mean = 0.1 * jax.random.normal(km, (cout,), jnp.float32)
    running_var = 1.0 + jnp.abs(jax.random.normal(kv, (cout,), jnp.float32))
    eps = 1e-5
    scale = gamma / jnp.sqrt(running_var + eps)
    bias = beta - running_mean * scale
    return w, scale, bias


# ------------------------------ _StemBlock fwd -----------------------------

def stem_block_forward(x_nchw, params):
    x = jnp.transpose(x_nchw, (0, 2, 3, 1))                           # NCHW -> NHWC
    out1 = conv3x3_s2_bn_relu(x, *params["stem1"])                    # (N, H/2, W/2, 128)
    br2 = conv1x1_bn_relu(out1, *params["stem2a"])                    # (N, H/2, W/2, 128)
    br2 = conv3x3_s2_bn_relu(br2, *params["stem2b"])                  # (N, H/4, W/4, 128)
    y = fused_pool_cat_conv1x1_bn_relu(out1, br2, *params["stem3"])   # (N, H/4, W/4, 32)
    return jnp.transpose(y, (0, 3, 1, 2))                             # NHWC -> NCHW


# ---------------------------------- main ------------------------------------

if __name__ == "__main__":
    num_input_channels = 4
    num_init_features = 32
    num_stem_features = num_init_features // 2

    key = jax.random.PRNGKey(0)
    kx, k1, k2a, k2b, k3 = jax.random.split(key, 5)
    x = jax.random.normal(kx, (2, num_input_channels, 16, 16), jnp.float32)

    params = {
        "stem1": init_basic_conv(k1, num_input_channels, num_init_features, 3),
        "stem2a": init_basic_conv(k2a, num_init_features, num_stem_features, 1),
        "stem2b": init_basic_conv(k2b, num_stem_features, num_init_features, 3),
        "stem3": init_basic_conv(k3, 2 * num_init_features, num_init_features, 1),
    }

    fwd = jax.jit(stem_block_forward)
    out = fwd(x, params)
    jax.block_until_ready(out)
    assert out.shape == (2, num_init_features, 4, 4), out.shape
    assert bool(jnp.all(jnp.isfinite(out)))
    print("KERNEL_OK")
</pallas_src>

<mosaic_0001>
module attributes {stable_mosaic.version = 11 : i64} {
  func.func @_conv3x3_s2_bn_relu_kernel(%arg0: i32, %arg1: memref<4x9x9x4xbf16, #tpu.memory_space<vmem>>, %arg2: memref<9x4x128xbf16, #tpu.memory_space<vmem>>, %arg3: memref<1x128xf32, #tpu.memory_space<vmem>>, %arg4: memref<1x128xf32, #tpu.memory_space<vmem>>, %arg5: memref<1x8x8x128xbf16, #tpu.memory_space<vmem>>) attributes {dimension_semantics = [#tpu.dimension_semantics<parallel>], iteration_bounds = array<i64: 2>, scalar_prefetch = 0 : i64, scratch_operands = 0 : i64, tpu.core_type = #tpu.core_type<tc>, window_params = [{transform_indices = @transform_0, window_bounds = array<i64: 4, 9, 9, 4>}, {pipeline_mode = #tpu.pipeline_mode<synchronous>, transform_indices = @transform_1, window_bounds = array<i64: 9, 4, 128>}, {pipeline_mode = #tpu.pipeline_mode<synchronous>, transform_indices = @transform_2, window_bounds = array<i64: 1, 128>}, {pipeline_mode = #tpu.pipeline_mode<synchronous>, transform_indices = @transform_3, window_bounds = array<i64: 1, 128>}, {transform_indices = @transform_4, window_bounds = array<i64: 1, 8, 8, 128>}]} {
    %c0 = arith.constant 0 : index
    %c0_0 = arith.constant 0 : index
    %c0_1 = arith.constant 0 : index
    %c0_2 = arith.constant 0 : index
    %0 = vector.load %arg1[%c0, %c0_0, %c0_1, %c0_2] : memref<4x9x9x4xbf16, #tpu.memory_space<vmem>>, vector<1x9x9x4xbf16>
    %1 = vector.shape_cast %0 : vector<1x9x9x4xbf16> to vector<9x9x4xbf16>
    %c1 = arith.constant 1 : index
    %c0_3 = arith.constant 0 : index
    %c0_4 = arith.constant 0 : index
    %c0_5 = arith.constant 0 : index
    %2 = vector.load %arg1[%c1, %c0_3, %c0_4, %c0_5] : memref<4x9x9x4xbf16, #tpu.memory_space<vmem>>, vector<1x9x9x4xbf16>
    %3 = vector.shape_cast %2 : vector<1x9x9x4xbf16> to vector<9x9x4xbf16>
    %c2 = arith.constant 2 : index
    %c0_6 = arith.constant 0 : index
    %c0_7 = arith.constant 0 : index
    %c0_8 = arith.constant 0 : index
    %4 = vector.load %arg1[%c2, %c0_6, %c0_7, %c0_8] : memref<4x9x9x4xbf16, #tpu.memory_space<vmem>>, vector<1x9x9x4xbf16>
    %5 = vector.shape_cast %4 : vector<1x9x9x4xbf16> to vector<9x9x4xbf16>
    %c3 = arith.constant 3 : index
    %c0_9 = arith.constant 0 : index
    %c0_10 = arith.constant 0 : index
    %c0_11 = arith.constant 0 : index
    %6 = vector.load %arg1[%c3, %c0_9, %c0_10, %c0_11] : memref<4x9x9x4xbf16, #tpu.memory_space<vmem>>, vector<1x9x9x4xbf16>
    %7 = vector.shape_cast %6 : vector<1x9x9x4xbf16> to vector<9x9x4xbf16>
    %cst = arith.constant 0.000000e+00 : f32
    %8 = vector.broadcast %cst : f32 to vector<64x128xf32>
    %9 = vector.extract_strided_slice %1 {offsets = [0, 0, 0], sizes = [8, 8, 4], strides = [1, 1, 1]} : vector<9x9x4xbf16> to vector<8x8x4xbf16>
    %10 = vector.shape_cast %9 : vector<8x8x4xbf16> to vector<64x4xbf16>
    %c0_12 = arith.constant 0 : index
    %c0_13 = arith.constant 0 : index
    %c0_14 = arith.constant 0 : index
    %11 = vector.load %arg2[%c0_12, %c0_13, %c0_14] : memref<9x4x128xbf16, #tpu.memory_space<vmem>>, vector<1x4x128xbf16>
    %12 = vector.shape_cast %11 : vector<1x4x128xbf16> to vector<4x128xbf16>
    %cst_15 = arith.constant dense<0.000000e+00> : vector<64x128xf32>
    %13 = tpu.matmul %10, %12, %cst_15 {dimension_numbers = #tpu.dot_dimension_numbers<[1], [0], [0], [1], [0, 0, 1, 1], [], []>} : vector<64x4xbf16>, vector<4x128xbf16>, vector<64x128xf32> -> vector<64x128xf32>
    %14 = arith.addf %8, %13 : vector<64x128xf32>
    %15 = vector.extract_strided_slice %3 {offsets = [0, 0, 0], sizes = [8, 8, 4], strides = [1, 1, 1]} : vector<9x9x4xbf16> to vector<8x8x4xbf16>
    %16 = vector.shape_cast %15 : vector<8x8x4xbf16> to vector<64x4xbf16>
    %c1_16 = arith.constant 1 : index
    %c0_17 = arith.constant 0 : index
    %c0_18 = arith.constant 0 : index
    %17 = vector.load %arg2[%c1_16, %c0_17, %c0_18] : memref<9x4x128xbf16, #tpu.memory_space<vmem>>, vector<1x4x128xbf16>
    %18 = vector.shape_cast %17 : vector<1x4x128xbf16> to vector<4x128xbf16>
    %cst_19 = arith.constant dense<0.000000e+00> : vector<64x128xf32>
    %19 = tpu.matmul %16, %18, %cst_19 {dimension_numbers = #tpu.dot_dimension_numbers<[1], [0], [0], [1], [0, 0, 1, 1], [], []>} : vector<64x4xbf16>, vector<4x128xbf16>, vector<64x128xf32> -> vector<64x128xf32>
    %20 = arith.addf %14, %19 : vector<64x128xf32>
    %21 = vector.extract_strided_slice %1 {offsets = [0, 1, 0], sizes = [8, 8, 4], strides = [1, 1, 1]} : vector<9x9x4xbf16> to vector<8x8x4xbf16>
    %22 = vector.shape_cast %21 : vector<8x8x4xbf16> to vector<64x4xbf16>
    %c2_20 = arith.constant 2 : index
    %c0_21 = arith.constant 0 : index
    %c0_22 = arith.constant 0 : index
    %23 = vector.load %arg2[%c2_20, %c0_21, %c0_22] : memref<9x4x128xbf16, #tpu.memory_space<vmem>>, vector<1x4x128xbf16>
    %24 = vector.shape_cast %23 : vector<1x4x128xbf16> to vector<4x128xbf16>
    %cst_23 = arith.constant dense<0.000000e+00> : vector<64x128xf32>
    %25 = tpu.matmul %22, %24, %cst_23 {dimension_numbers = #tpu.dot_dimension_numbers<[1], [0], [0], [1], [0, 0, 1, 1], [], []>} : vector<64x4xbf16>, vector<4x128xbf16>, vector<64x128xf32> -> vector<64x128xf32>
    %26 = arith.addf %20, %25 : vector<64x128xf32>
    %27 = vector.extract_strided_slice %5 {offsets = [0, 0, 0], sizes = [8, 8, 4], strides = [1, 1, 1]} : vector<9x9x4xbf16> to vector<8x8x4xbf16>
    %28 = vector.shape_cast %27 : vector<8x8x4xbf16> to vector<64x4xbf16>
    %c3_24 = arith.constant 3 : index
    %c0_25 = arith.constant 0 : index
    %c0_26 = arith.constant 0 : index
    %29 = vector.load %arg2[%c3_24, %c0_25, %c0_26] : memref<9x4x128xbf16, #tpu.memory_space<vmem>>, vector<1x4x128xbf16>
    %30 = vector.shape_cast %29 : vector<1x4x128xbf16> to vector<4x128xbf16>
    %cst_27 = arith.constant dense<0.000000e+00> : vector<64x128xf32>
    %31 = tpu.matmul %28, %30, %cst_27 {dimension_numbers = #tpu.dot_dimension_numbers<[1], [0], [0], [1], [0, 0, 1, 1], [], []>} : vector<64x4xbf16>, vector<4x128xbf16>, vector<64x128xf32> -> vector<64x128xf32>
    %32 = arith.addf %26, %31 : vector<64x128xf32>
    %33 = vector.extract_strided_slice %7 {offsets = [0, 0, 0], sizes = [8, 8, 4], strides = [1, 1, 1]} : vector<9x9x4xbf16> to vector<8x8x4xbf16>
    %34 = vector.shape_cast %33 : vector<8x8x4xbf16> to vector<64x4xbf16>
    %c4 = arith.constant 4 : index
    %c0_28 = arith.constant 0 : index
    %c0_29 = arith.constant 0 : index
    %35 = vector.load %arg2[%c4, %c0_28, %c0_29] : memref<9x4x128xbf16, #tpu.memory_space<vmem>>, vector<1x4x128xbf16>
    %36 = vector.shape_cast %35 : vector<1x4x128xbf16> to vector<4x128xbf16>
    %cst_30 = arith.constant dense<0.000000e+00> : vector<64x128xf32>
    %37 = tpu.matmul %34, %36, %cst_30 {dimension_numbers = #tpu.dot_dimension_numbers<[1], [0], [0], [1], [0, 0, 1, 1], [], []>} : vector<64x4xbf16>, vector<4x128xbf16>, vector<64x128xf32> -> vector<64x128xf32>
    %38 = arith.addf %32, %37 : vector<64x128xf32>
    %39 = vector.extract_strided_slice %5 {offsets = [0, 1, 0], sizes = [8, 8, 4], strides = [1, 1, 1]} : vector<9x9x4xbf16> to vector<8x8x4xbf16>
    %40 = vector.shape_cast %39 : vector<8x8x4xbf16> to vector<64x4xbf16>
    %c5 = arith.constant 5 : index
    %c0_31 = arith.constant 0 : index
    %c0_32 = arith.constant 0 : index
    %41 = vector.load %arg2[%c5, %c0_31, %c0_32] : memref<9x4x128xbf16, #tpu.memory_space<vmem>>, vector<1x4x128xbf16>
    %42 = vector.shape_cast %41 : vector<1x4x128xbf16> to vector<4x128xbf16>
    %cst_33 = arith.constant dense<0.000000e+00> : vector<64x128xf32>
    %43 = tpu.matmul %40, %42, %cst_33 {dimension_numbers = #tpu.dot_dimension_numbers<[1], [0], [0], [1], [0, 0, 1, 1], [], []>} : vector<64x4xbf16>, vector<4x128xbf16>, vector<64x128xf32> -> vector<64x128xf32>
    %44 = arith.addf %38, %43 : vector<64x128xf32>
    %45 = vector.extract_strided_slice %1 {offsets = [1, 0, 0], sizes = [8, 8, 4], strides = [1, 1, 1]} : vector<9x9x4xbf16> to vector<8x8x4xbf16>
    %46 = vector.shape_cast %45 : vector<8x8x4xbf16> to vector<64x4xbf16>
    %c6 = arith.constant 6 : index
    %c0_34 = arith.constant 0 : index
    %c0_35 = arith.constant 0 : index
    %47 = vector.load %arg2[%c6, %c0_34, %c0_35] : memref<9x4x128xbf16, #tpu.memory_space<vmem>>, vector<1x4x128xbf16>
    %48 = vector.shape_cast %47 : vector<1x4x128xbf16> to vector<4x128xbf16>
    %cst_36 = arith.constant dense<0.000000e+00> : vector<64x128xf32>
    %49 = tpu.matmul %46, %48, %cst_36 {dimension_numbers = #tpu.dot_dimension_numbers<[1], [0], [0], [1], [0, 0, 1, 1], [], []>} : vector<64x4xbf16>, vector<4x128xbf16>, vector<64x128xf32> -> vector<64x128xf32>
    %50 = arith.addf %44, %49 : vector<64x128xf32>
    %51 = vector.extract_strided_slice %3 {offsets = [1, 0, 0], sizes = [8, 8, 4], strides = [1, 1, 1]} : vector<9x9x4xbf16> to vector<8x8x4xbf16>
    %52 = vector.shape_cast %51 : vector<8x8x4xbf16> to vector<64x4xbf16>
    %c7 = arith.constant 7 : index
    %c0_37 = arith.constant 0 : index
    %c0_38 = arith.constant 0 : index
    %53 = vector.load %arg2[%c7, %c0_37, %c0_38] : memref<9x4x128xbf16, #tpu.memory_space<vmem>>, vector<1x4x128xbf16>
    %54 = vector.shape_cast %53 : vector<1x4x128xbf16> to vector<4x128xbf16>
    %cst_39 = arith.constant dense<0.000000e+00> : vector<64x128xf32>
    %55 = tpu.matmul %52, %54, %cst_39 {dimension_numbers = #tpu.dot_dimension_numbers<[1], [0], [0], [1], [0, 0, 1, 1], [], []>} : vector<64x4xbf16>, vector<4x128xbf16>, vector<64x128xf32> -> vector<64x128xf32>
    %56 = arith.addf %50, %55 : vector<64x128xf32>
    %57 = vector.extract_strided_slice %1 {offsets = [1, 1, 0], sizes = [8, 8, 4], strides = [1, 1, 1]} : vector<9x9x4xbf16> to vector<8x8x4xbf16>
    %58 = vector.shape_cast %57 : vector<8x8x4xbf16> to vector<64x4xbf16>
    %c8 = arith.constant 8 : index
    %c0_40 = arith.constant 0 : index
    %c0_41 = arith.constant 0 : index
    %59 = vector.load %arg2[%c8, %c0_40, %c0_41] : memref<9x4x128xbf16, #tpu.memory_space<vmem>>, vector<1x4x128xbf16>
    %60 = vector.shape_cast %59 : vector<1x4x128xbf16> to vector<4x128xbf16>
    %cst_42 = arith.constant dense<0.000000e+00> : vector<64x128xf32>
    %61 = tpu.matmul %58, %60, %cst_42 {dimension_numbers = #tpu.dot_dimension_numbers<[1], [0], [0], [1], [0, 0, 1, 1], [], []>} : vector<64x4xbf16>, vector<4x128xbf16>, vector<64x128xf32> -> vector<64x128xf32>
    %62 = arith.addf %56, %61 : vector<64x128xf32>
    %c0_43 = arith.constant 0 : index
    %c0_44 = arith.constant 0 : index
    %63 = vector.load %arg3[%c0_43, %c0_44] : memref<1x128xf32, #tpu.memory_space<vmem>>, vector<1x128xf32>
    %64 = vector.broadcast %63 : vector<1x128xf32> to vector<64x128xf32>
    %65 = arith.mulf %62, %64 : vector<64x128xf32>
    %c0_45 = arith.constant 0 : index
    %c0_46 = arith.constant 0 : index
    %66 = vector.load %arg4[%c0_45, %c0_46] : memref<1x128xf32, #tpu.memory_space<vmem>>, vector<1x128xf32>
    %67 = vector.broadcast %66 : vector<1x128xf32> to vector<64x128xf32>
    %68 = arith.addf %65, %67 : vector<64x128xf32>
    %cst_47 = arith.constant 0.000000e+00 : f32
    %69 = vector.broadcast %cst_47 : f32 to vector<64x128xf32>
    %70 = arith.maximumf %68, %69 : vector<64x128xf32>
    %71 = vector.shape_cast %70 : vector<64x128xf32> to vector<8x8x128xf32>
    %72 = arith.truncf %71 : vector<8x8x128xf32> to vector<8x8x128xbf16>
    %c0_48 = arith.constant 0 : index
    %c0_49 = arith.constant 0 : index
    %c0_50 = arith.constant 0 : index
    %c0_51 = arith.constant 0 : index
    %73 = vector.load %arg5[%c0_48, %c0_49, %c0_50, %c0_51] : memref<1x8x8x128xbf16, #tpu.memory_space<vmem>>, vector<1x8x8x128xbf16>
    %74 = vector.shape_cast %73 : vector<1x8x8x128xbf16> to vector<8x8x128xbf16>
    %75 = vector.shape_cast %72 : vector<8x8x128xbf16> to vector<1x8x8x128xbf16>
    tpu.vector_store %arg5[%c0_48, %c0_49, %c0_50, %c0_51], %75 {strides = array<i32>} : memref<1x8x8x128xbf16, #tpu.memory_space<vmem>>, vector<1x8x8x128xbf16>,
    return
  }
  func.func @transform_0(%arg0: i32) -> (i32, i32, i32, i32) {
    %c0_i32 = arith.constant 0 : i32
    %c0_i32_0 = arith.constant 0 : i32
    %c0_i32_1 = arith.constant 0 : i32
    %c0_i32_2 = arith.constant 0 : i32
    return %arg0, %c0_i32, %c0_i32_0, %c0_i32_1 : i32, i32, i32, i32
  }
  func.func @transform_1(%arg0: i32) -> (i32, i32, i32) {
    %c0_i32 = arith.constant 0 : i32
    %c0_i32_0 = arith.constant 0 : i32
    %c0_i32_1 = arith.constant 0 : i32
    %c0_i32_2 = arith.constant 0 : i32
    return %c0_i32, %c0_i32_0, %c0_i32_1 : i32, i32, i32
  }
  func.func @transform_2(%arg0: i32) -> (i32, i32) {
    %c0_i32 = arith.constant 0 : i32
    %c0_i32_0 = arith.constant 0 : i32
    %c0_i32_1 = arith.constant 0 : i32
    return %c0_i32, %c0_i32_0 : i32, i32
  }
  func.func @transform_3(%arg0: i32) -> (i32, i32) {
    %c0_i32 = arith.constant 0 : i32
    %c0_i32_0 = arith.constant 0 : i32
    %c0_i32_1 = arith.constant 0 : i32
    return %c0_i32, %c0_i32_0 : i32, i32
  }
  func.func @transform_4(%arg0: i32) -> (i32, i32, i32, i32) {
    %c0_i32 = arith.constant 0 : i32
    %c0_i32_0 = arith.constant 0 : i32
    %c0_i32_1 = arith.constant 0 : i32
    %c0_i32_2 = arith.constant 0 : i32
    return %arg0, %c0_i32, %c0_i32_0, %c0_i32_1 : i32, i32, i32, i32
  }
}

module attributes {stable_mosaic.version = 11 : i64} {
  func.func @_matmul_bn_relu_kernel(%arg0: i32, %arg1: memref<128x128xbf16, #tpu.memory_space<vmem>>, %arg2: memref<128x128xbf16, #tpu.memory_space<vmem>>, %arg3: memref<1x128xf32, #tpu.memory_space<vmem>>, %arg4: memref<1x128xf32, #tpu.memory_space<vmem>>, %arg5: memref<128x128xbf16, #tpu.memory_space<vmem>>) attributes {dimension_semantics = [#tpu.dimension_semantics<parallel>], iteration_bounds = array<i64: 1>, scalar_prefetch = 0 : i64, scratch_operands = 0 : i64, tpu.core_type = #tpu.core_type<tc>, window_params = [{transform_indices = @transform_0, window_bounds = array<i64: 128, 128>}, {pipeline_mode = #tpu.pipeline_mode<synchronous>, transform_indices = @transform_1, window_bounds = array<i64: 128, 128>}, {pipeline_mode = #tpu.pipeline_mode<synchronous>, transform_indices = @transform_2, window_bounds = array<i64: 1, 128>}, {pipeline_mode = #tpu.pipeline_mode<synchronous>, transform_indices = @transform_3, window_bounds = array<i64: 1, 128>}, {transform_indices = @transform_4, window_bounds = array<i64: 128, 128>}]} {
    %c0 = arith.constant 0 : index
    %c0_0 = arith.constant 0 : index
    %0 = vector.load %arg1[%c0, %c0_0] : memref<128x128xbf16, #tpu.memory_space<vmem>>, vector<128x128xbf16>
    %c0_1 = arith.constant 0 : index
    %c0_2 = arith.constant 0 : index
    %1 = vector.load %arg2[%c0_1, %c0_2] : memref<128x128xbf16, #tpu.memory_space<vmem>>, vector<128x128xbf16>
    %cst = arith.constant dense<0.000000e+00> : vector<128x128xf32>
    %2 = tpu.matmul %0, %1, %cst {dimension_numbers = #tpu.dot_dimension_numbers<[1], [0], [0], [1], [0, 0, 1, 1], [], []>} : vector<128x128xbf16>, vector<128x128xbf16>, vector<128x128xf32> -> vector<128x128xf32>
    %c0_3 = arith.constant 0 : index
    %c0_4 = arith.constant 0 : index
    %3 = vector.load %arg3[%c0_3, %c0_4] : memref<1x128xf32, #tpu.memory_space<vmem>>, vector<1x128xf32>
    %4 = vector.broadcast %3 : vector<1x128xf32> to vector<128x128xf32>
    %5 = arith.mulf %2, %4 : vector<128x128xf32>
    %c0_5 = arith.constant 0 : index
    %c0_6 = arith.constant 0 : index
    %6 = vector.load %arg4[%c0_5, %c0_6] : memref<1x128xf32, #tpu.memory_space<vmem>>, vector<1x128xf32>
    %7 = vector.broadcast %6 : vector<1x128xf32> to vector<128x128xf32>
    %8 = arith.addf %5, %7 : vector<128x128xf32>
    %cst_7 = arith.constant 0.000000e+00 : f32
    %9 = vector.broadcast %cst_7 : f32 to vector<128x128xf32>
    %10 = arith.maximumf %8, %9 : vector<128x128xf32>
    %11 = arith.truncf %10 : vector<128x128xf32> to vector<128x128xbf16>
    %c0_8 = arith.constant 0 : index
    %c0_9 = arith.constant 0 : index
    %12 = vector.load %arg5[%c0_8, %c0_9] : memref<128x128xbf16, #tpu.memory_space<vmem>>, vector<128x128xbf16>
    tpu.vector_store %arg5[%c0_8, %c0_9], %11 {strides = array<i32>} : memref<128x128xbf16, #tpu.memory_space<vmem>>, vector<128x128xbf16>,
    return
  }
  func.func @transform_0(%arg0: i32) -> (i32, i32) {
    %c0_i32 = arith.constant 0 : i32
    %c0_i32_0 = arith.constant 0 : i32
    return %arg0, %c0_i32 : i32, i32
  }
  func.func @transform_1(%arg0: i32) -> (i32, i32) {
    %c0_i32 = arith.constant 0 : i32
    %c0_i32_0 = arith.constant 0 : i32
    %c0_i32_1 = arith.constant 0 : i32
    return %c0_i32, %c0_i32_0 : i32, i32
  }
  func.func @transform_2(%arg0: i32) -> (i32, i32) {
    %c0_i32 = arith.constant 0 : i32
    %c0_i32_0 = arith.constant 0 : i32
    %c0_i32_1 = arith.constant 0 : i32
    return %c0_i32, %c0_i32_0 : i32, i32
  }
  func.func @transform_3(%arg0: i32) -> (i32, i32) {
    %c0_i32 = arith.constant 0 : i32
    %c0_i32_0 = arith.constant 0 : i32
    %c0_i32_1 = arith.constant 0 : i32
    return %c0_i32, %c0_i32_0 : i32, i32
  }
  func.func @transform_4(%arg0: i32) -> (i32, i32) {
    %c0_i32 = arith.constant 0 : i32
    %c0_i32_0 = arith.constant 0 : i32
    return %arg0, %c0_i32 : i32, i32
  }
}

module attributes {stable_mosaic.version = 11 : i64} {
  func.func @_conv3x3_s2_bn_relu_kernel(%arg0: i32, %arg1: memref<4x5x5x128xbf16, #tpu.memory_space<vmem>>, %arg2: memref<9x128x128xbf16, #tpu.memory_space<vmem>>, %arg3: memref<1x128xf32, #tpu.memory_space<vmem>>, %arg4: memref<1x128xf32, #tpu.memory_space<vmem>>, %arg5: memref<1x4x4x128xbf16, #tpu.memory_space<vmem>>) attributes {dimension_semantics = [#tpu.dimension_semantics<parallel>], iteration_bounds = array<i64: 2>, scalar_prefetch = 0 : i64, scratch_operands = 0 : i64, tpu.core_type = #tpu.core_type<tc>, window_params = [{transform_indices = @transform_0, window_bounds = array<i64: 4, 5, 5, 128>}, {pipeline_mode = #tpu.pipeline_mode<synchronous>, transform_indices = @transform_1, window_bounds = array<i64: 9, 128, 128>}, {pipeline_mode = #tpu.pipeline_mode<synchronous>, transform_indices = @transform_2, window_bounds = array<i64: 1, 128>}, {pipeline_mode = #tpu.pipeline_mode<synchronous>, transform_indices = @transform_3, window_bounds = array<i64: 1, 128>}, {transform_indices = @transform_4, window_bounds = array<i64: 1, 4, 4, 128>}]} {
    %c0 = arith.constant 0 : index
    %c0_0 = arith.constant 0 : index
    %c0_1 = arith.constant 0 : index
    %c0_2 = arith.constant 0 : index
    %0 = vector.load %arg1[%c0, %c0_0, %c0_1, %c0_2] : memref<4x5x5x128xbf16, #tpu.memory_space<vmem>>, vector<1x5x5x128xbf16>
    %1 = vector.shape_cast %0 : vector<1x5x5x128xbf16> to vector<5x5x128xbf16>
    %c1 = arith.constant 1 : index
    %c0_3 = arith.constant 0 : index
    %c0_4 = arith.constant 0 : index
    %c0_5 = arith.constant 0 : index
    %2 = vector.load %arg1[%c1, %c0_3, %c0_4, %c0_5] : memref<4x5x5x128xbf16, #tpu.memory_space<vmem>>, vector<1x5x5x128xbf16>
    %3 = vector.shape_cast %2 : vector<1x5x5x128xbf16> to vector<5x5x128xbf16>
    %c2 = arith.constant 2 : index
    %c0_6 = arith.constant 0 : index
    %c0_7 = arith.constant 0 : index
    %c0_8 = arith.constant 0 : index
    %4 = vector.load %arg1[%c2, %c0_6, %c0_7, %c0_8] : memref<4x5x5x128xbf16, #tpu.memory_space<vmem>>, vector<1x5x5x128xbf16>
    %5 = vector.shape_cast %4 : vector<1x5x5x128xbf16> to vector<5x5x128xbf16>
    %c3 = arith.constant 3 : index
    %c0_9 = arith.constant 0 : index
    %c0_10 = arith.constant 0 : index
    %c0_11 = arith.constant 0 : index
    %6 = vector.load %arg1[%c3, %c0_9, %c0_10, %c0_11] : memref<4x5x5x128xbf16, #tpu.memory_space<vmem>>, vector<1x5x5x128xbf16>
    %7 = vector.shape_cast %6 : vector<1x5x5x128xbf16> to vector<5x5x128xbf16>
    %cst = arith.constant 0.000000e+00 : f32
    %8 = vector.broadcast %cst : f32 to vector<16x128xf32>
    %9 = vector.extract_strided_slice %1 {offsets = [0, 0, 0], sizes = [4, 4, 128], strides = [1, 1, 1]} : vector<5x5x128xbf16> to vector<4x4x128xbf16>
    %10 = vector.shape_cast %9 : vector<4x4x128xbf16> to vector<16x128xbf16>
    %c0_12 = arith.constant 0 : index
    %c0_13 = arith.constant 0 : index
    %c0_14 = arith.constant 0 : index
    %11 = vector.load %arg2[%c0_12, %c0_13, %c0_14] : memref<9x128x128xbf16, #tpu.memory_space<vmem>>, vector<1x128x128xbf16>
    %12 = vector.shape_cast %11 : vector<1x128x128xbf16> to vector<128x128xbf16>
    %cst_15 = arith.constant dense<0.000000e+00> : vector<16x128xf32>
    %13 = tpu.matmul %10, %12, %cst_15 {dimension_numbers = #tpu.dot_dimension_numbers<[1], [0], [0], [1], [0, 0, 1, 1], [], []>} : vector<16x128xbf16>, vector<128x128xbf16>, vector<16x128xf32> -> vector<16x128xf32>
    %14 = arith.addf %8, %13 : vector<16x128xf32>
    %15 = vector.extract_strided_slice %3 {offsets = [0, 0, 0], sizes = [4, 4, 128], strides = [1, 1, 1]} : vector<5x5x128xbf16> to vector<4x4x128xbf16>
    %16 = vector.shape_cast %15 : vector<4x4x128xbf16> to vector<16x128xbf16>
    %c1_16 = arith.constant 1 : index
    %c0_17 = arith.constant 0 : index
    %c0_18 = arith.constant 0 : index
    %17 = vector.load %arg2[%c1_16, %c0_17, %c0_18] : memref<9x128x128xbf16, #tpu.memory_space<vmem>>, vector<1x128x128xbf16>
    %18 = vector.shape_cast %17 : vector<1x128x128xbf16> to vector<128x128xbf16>
    %cst_19 = arith.constant dense<0.000000e+00> : vector<16x128xf32>
    %19 = tpu.matmul %16, %18, %cst_19 {dimension_numbers = #tpu.dot_dimension_numbers<[1], [0], [0], [1], [0, 0, 1, 1], [], []>} : vector<16x128xbf16>, vector<128x128xbf16>, vector<16x128xf32> -> vector<16x128xf32>
    %20 = arith.addf %14, %19 : vector<16x128xf32>
    %21 = vector.extract_strided_slice %1 {offsets = [0, 1, 0], sizes = [4, 4, 128], strides = [1, 1, 1]} : vector<5x5x128xbf16> to vector<4x4x128xbf16>
    %22 = vector.shape_cast %21 : vector<4x4x128xbf16> to vector<16x128xbf16>
    %c2_20 = arith.constant 2 : index
    %c0_21 = arith.constant 0 : index
    %c0_22 = arith.constant 0 : index
    %23 = vector.load %arg2[%c2_20, %c0_21, %c0_22] : memref<9x128x128xbf16, #tpu.memory_space<vmem>>, vector<1x128x128xbf16>
    %24 = vector.shape_cast %23 : vector<1x128x128xbf16> to vector<128x128xbf16>
    %cst_23 = arith.constant dense<0.000000e+00> : vector<16x128xf32>
    %25 = tpu.matmul %22, %24, %cst_23 {dimension_numbers = #tpu.dot_dimension_numbers<[1], [0], [0], [1], [0, 0, 1, 1], [], []>} : vector<16x128xbf16>, vector<128x128xbf16>, vector<16x128xf32> -> vector<16x128xf32>
    %26 = arith.addf %20, %25 : vector<16x128xf32>
    %27 = vector.extract_strided_slice %5 {offsets = [0, 0, 0], sizes = [4, 4, 128], strides = [1, 1, 1]} : vector<5x5x128xbf16> to vector<4x4x128xbf16>
    %28 = vector.shape_cast %27 : vector<4x4x128xbf16> to vector<16x128xbf16>
    %c3_24 = arith.constant 3 : index
    %c0_25 = arith.constant 0 : index
    %c0_26 = arith.constant 0 : index
    %29 = vector.load %arg2[%c3_24, %c0_25, %c0_26] : memref<9x128x128xbf16, #tpu.memory_space<vmem>>, vector<1x128x128xbf16>
    %30 = vector.shape_cast %29 : vector<1x128x128xbf16> to vector<128x128xbf16>
    %cst_27 = arith.constant dense<0.000000e+00> : vector<16x128xf32>
    %31 = tpu.matmul %28, %30, %cst_27 {dimension_numbers = #tpu.dot_dimension_numbers<[1], [0], [0], [1], [0, 0, 1, 1], [], []>} : vector<16x128xbf16>, vector<128x128xbf16>, vector<16x128xf32> -> vector<16x128xf32>
    %32 = arith.addf %26, %31 : vector<16x128xf32>
    %33 = vector.extract_strided_slice %7 {offsets = [0, 0, 0], sizes = [4, 4, 128], strides = [1, 1, 1]} : vector<5x5x128xbf16> to vector<4x4x128xbf16>
    %34 = vector.shape_cast %33 : vector<4x4x128xbf16> to vector<16x128xbf16>
    %c4 = arith.constant 4 : index
    %c0_28 = arith.constant 0 : index
    %c0_29 = arith.constant 0 : index
    %35 = vector.load %arg2[%c4, %c0_28, %c0_29] : memref<9x128x128xbf16, #tpu.memory_space<vmem>>, vector<1x128x128xbf16>
    %36 = vector.shape_cast %35 : vector<1x128x128xbf16> to vector<128x128xbf16>
    %cst_30 = arith.constant dense<0.000000e+00> : vector<16x128xf32>
    %37 = tpu.matmul %34, %36, %cst_30 {dimension_numbers = #tpu.dot_dimension_numbers<[1], [0], [0], [1], [0, 0, 1, 1], [], []>} : vector<16x128xbf16>, vector<128x128xbf16>, vector<16x128xf32> -> vector<16x128xf32>
    %38 = arith.addf %32, %37 : vector<16x128xf32>
    %39 = vector.extract_strided_slice %5 {offsets = [0, 1, 0], sizes = [4, 4, 128], strides = [1, 1, 1]} : vector<5x5x128xbf16> to vector<4x4x128xbf16>
    %40 = vector.shape_cast %39 : vector<4x4x128xbf16> to vector<16x128xbf16>
    %c5 = arith.constant 5 : index
    %c0_31 = arith.constant 0 : index
    %c0_32 = arith.constant 0 : index
    %41 = vector.load %arg2[%c5, %c0_31, %c0_32] : memref<9x128x128xbf16, #tpu.memory_space<vmem>>, vector<1x128x128xbf16>
    %42 = vector.shape_cast %41 : vector<1x128x128xbf16> to vector<128x128xbf16>
    %cst_33 = arith.constant dense<0.000000e+00> : vector<16x128xf32>
    %43 = tpu.matmul %40, %42, %cst_33 {dimension_numbers = #tpu.dot_dimension_numbers<[1], [0], [0], [1], [0, 0, 1, 1], [], []>} : vector<16x128xbf16>, vector<128x128xbf16>, vector<16x128xf32> -> vector<16x128xf32>
    %44 = arith.addf %38, %43 : vector<16x128xf32>
    %45 = vector.extract_strided_slice %1 {offsets = [1, 0, 0], sizes = [4, 4, 128], strides = [1, 1, 1]} : vector<5x5x128xbf16> to vector<4x4x128xbf16>
    %46 = vector.shape_cast %45 : vector<4x4x128xbf16> to vector<16x128xbf16>
    %c6 = arith.constant 6 : index
    %c0_34 = arith.constant 0 : index
    %c0_35 = arith.constant 0 : index
    %47 = vector.load %arg2[%c6, %c0_34, %c0_35] : memref<9x128x128xbf16, #tpu.memory_space<vmem>>, vector<1x128x128xbf16>
    %48 = vector.shape_cast %47 : vector<1x128x128xbf16> to vector<128x128xbf16>
    %cst_36 = arith.constant dense<0.000000e+00> : vector<16x128xf32>
    %49 = tpu.matmul %46, %48, %cst_36 {dimension_numbers = #tpu.dot_dimension_numbers<[1], [0], [0], [1], [0, 0, 1, 1], [], []>} : vector<16x128xbf16>, vector<128x128xbf16>, vector<16x128xf32> -> vector<16x128xf32>
    %50 = arith.addf %44, %49 : vector<16x128xf32>
    %51 = vector.extract_strided_slice %3 {offsets = [1, 0, 0], sizes = [4, 4, 128], strides = [1, 1, 1]} : vector<5x5x128xbf16> to vector<4x4x128xbf16>
    %52 = vector.shape_cast %51 : vector<4x4x128xbf16> to vector<16x128xbf16>
    %c7 = arith.constant 7 : index
    %c0_37 = arith.constant 0 : index
    %c0_38 = arith.constant 0 : index
    %53 = vector.load %arg2[%c7, %c0_37, %c0_38] : memref<9x128x128xbf16, #tpu.memory_space<vmem>>, vector<1x128x128xbf16>
    %54 = vector.shape_cast %53 : vector<1x128x128xbf16> to vector<128x128xbf16>
    %cst_39 = arith.constant dense<0.000000e+00> : vector<16x128xf32>
    %55 = tpu.matmul %52, %54, %cst_39 {dimension_numbers = #tpu.dot_dimension_numbers<[1], [0], [0], [1], [0, 0, 1, 1], [], []>} : vector<16x128xbf16>, vector<128x128xbf16>, vector<16x128xf32> -> vector<16x128xf32>
    %56 = arith.addf %50, %55 : vector<16x128xf32>
    %57 = vector.extract_strided_slice %1 {offsets = [1, 1, 0], sizes = [4, 4, 128], strides = [1, 1, 1]} : vector<5x5x128xbf16> to vector<4x4x128xbf16>
    %58 = vector.shape_cast %57 : vector<4x4x128xbf16> to vector<16x128xbf16>
    %c8 = arith.constant 8 : index
    %c0_40 = arith.constant 0 : index
    %c0_41 = arith.constant 0 : index
    %59 = vector.load %arg2[%c8, %c0_40, %c0_41] : memref<9x128x128xbf16, #tpu.memory_space<vmem>>, vector<1x128x128xbf16>
    %60 = vector.shape_cast %59 : vector<1x128x128xbf16> to vector<128x128xbf16>
    %cst_42 = arith.constant dense<0.000000e+00> : vector<16x128xf32>
    %61 = tpu.matmul %58, %60, %cst_42 {dimension_numbers = #tpu.dot_dimension_numbers<[1], [0], [0], [1], [0, 0, 1, 1], [], []>} : vector<16x128xbf16>, vector<128x128xbf16>, vector<16x128xf32> -> vector<16x128xf32>
    %62 = arith.addf %56, %61 : vector<16x128xf32>
    %c0_43 = arith.constant 0 : index
    %c0_44 = arith.constant 0 : index
    %63 = vector.load %arg3[%c0_43, %c0_44] : memref<1x128xf32, #tpu.memory_space<vmem>>, vector<1x128xf32>
    %64 = vector.broadcast %63 : vector<1x128xf32> to vector<16x128xf32>
    %65 = arith.mulf %62, %64 : vector<16x128xf32>
    %c0_45 = arith.constant 0 : index
    %c0_46 = arith.constant 0 : index
    %66 = vector.load %arg4[%c0_45, %c0_46] : memref<1x128xf32, #tpu.memory_space<vmem>>, vector<1x128xf32>
    %67 = vector.broadcast %66 : vector<1x128xf32> to vector<16x128xf32>
    %68 = arith.addf %65, %67 : vector<16x128xf32>
    %cst_47 = arith.constant 0.000000e+00 : f32
    %69 = vector.broadcast %cst_47 : f32 to vector<16x128xf32>
    %70 = arith.maximumf %68, %69 : vector<16x128xf32>
    %71 = vector.shape_cast %70 : vector<16x128xf32> to vector<4x4x128xf32>
    %72 = arith.truncf %71 : vector<4x4x128xf32> to vector<4x4x128xbf16>
    %c0_48 = arith.constant 0 : index
    %c0_49 = arith.constant 0 : index
    %c0_50 = arith.constant 0 : index
    %c0_51 = arith.constant 0 : index
    %73 = vector.load %arg5[%c0_48, %c0_49, %c0_50, %c0_51] : memref<1x4x4x128xbf16, #tpu.memory_space<vmem>>, vector<1x4x4x128xbf16>
    %74 = vector.shape_cast %73 : vector<1x4x4x128xbf16> to vector<4x4x128xbf16>
    %75 = vector.shape_cast %72 : vector<4x4x128xbf16> to vector<1x4x4x128xbf16>
    tpu.vector_store %arg5[%c0_48, %c0_49, %c0_50, %c0_51], %75 {strides = array<i32>} : memref<1x4x4x128xbf16, #tpu.memory_space<vmem>>, vector<1x4x4x128xbf16>,
    return
  }
  func.func @transform_0(%arg0: i32) -> (i32, i32, i32, i32) {
    %c0_i32 = arith.constant 0 : i32
    %c0_i32_0 = arith.constant 0 : i32
    %c0_i32_1 = arith.constant 0 : i32
    %c0_i32_2 = arith.constant 0 : i32
    return %arg0, %c0_i32, %c0_i32_0, %c0_i32_1 : i32, i32, i32, i32
  }
  func.func @transform_1(%arg0: i32) -> (i32, i32, i32) {
    %c0_i32 = arith.constant 0 : i32
    %c0_i32_0 = arith.constant 0 : i32
    %c0_i32_1 = arith.constant 0 : i32
    %c0_i32_2 = arith.constant 0 : i32
    return %c0_i32, %c0_i32_0, %c0_i32_1 : i32, i32, i32
  }
  func.func @transform_2(%arg0: i32) -> (i32, i32) {
    %c0_i32 = arith.constant 0 : i32
    %c0_i32_0 = arith.constant 0 : i32
    %c0_i32_1 = arith.constant 0 : i32
    return %c0_i32, %c0_i32_0 : i32, i32
  }
  func.func @transform_3(%arg0: i32) -> (i32, i32) {
    %c0_i32 = arith.constant 0 : i32
    %c0_i32_0 = arith.constant 0 : i32
    %c0_i32_1 = arith.constant 0 : i32
    return %c0_i32, %c0_i32_0 : i32, i32
  }
  func.func @transform_4(%arg0: i32) -> (i32, i32, i32, i32) {
    %c0_i32 = arith.constant 0 : i32
    %c0_i32_0 = arith.constant 0 : i32
    %c0_i32_1 = arith.constant 0 : i32
    %c0_i32_2 = arith.constant 0 : i32
    return %arg0, %c0_i32, %c0_i32_0, %c0_i32_1 : i32, i32, i32, i32
  }
}

module attributes {stable_mosaic.version = 11 : i64} {
  func.func @_pool_cat_conv1x1_bn_relu_kernel(%arg0: i32, %arg1: memref<4x4x4x128xbf16, #tpu.memory_space<vmem>>, %arg2: memref<1x4x4x128xbf16, #tpu.memory_space<vmem>>, %arg3: memref<128x128xbf16, #tpu.memory_space<vmem>>, %arg4: memref<128x128xbf16, #tpu.memory_space<vmem>>, %arg5: memref<1x128xf32, #tpu.memory_space<vmem>>, %arg6: memref<1x128xf32, #tpu.memory_space<vmem>>, %arg7: memref<1x4x4x128xf32, #tpu.memory_space<vmem>>) attributes {dimension_semantics = [#tpu.dimension_semantics<parallel>], iteration_bounds = array<i64: 2>, scalar_prefetch = 0 : i64, scratch_operands = 0 : i64, tpu.core_type = #tpu.core_type<tc>, window_params = [{transform_indices = @transform_0, window_bounds = array<i64: 4, 4, 4, 128>}, {transform_indices = @transform_1, window_bounds = array<i64: 1, 4, 4, 128>}, {pipeline_mode = #tpu.pipeline_mode<synchronous>, transform_indices = @transform_2, window_bounds = array<i64: 128, 128>}, {pipeline_mode = #tpu.pipeline_mode<synchronous>, transform_indices = @transform_3, window_bounds = array<i64: 128, 128>}, {pipeline_mode = #tpu.pipeline_mode<synchronous>, transform_indices = @transform_4, window_bounds = array<i64: 1, 128>}, {pipeline_mode = #tpu.pipeline_mode<synchronous>, transform_indices = @transform_5, window_bounds = array<i64: 1, 128>}, {transform_indices = @transform_6, window_bounds = array<i64: 1, 4, 4, 128>}]} {
    %c0 = arith.constant 0 : index
    %c0_0 = arith.constant 0 : index
    %c0_1 = arith.constant 0 : index
    %c0_2 = arith.constant 0 : index
    %0 = vector.load %arg1[%c0, %c0_0, %c0_1, %c0_2] : memref<4x4x4x128xbf16, #tpu.memory_space<vmem>>, vector<1x4x4x128xbf16>
    %1 = vector.shape_cast %0 : vector<1x4x4x128xbf16> to vector<4x4x128xbf16>
    %c1 = arith.constant 1 : index
    %c0_3 = arith.constant 0 : index
    %c0_4 = arith.constant 0 : index
    %c0_5 = arith.constant 0 : index
    %2 = vector.load %arg1[%c1, %c0_3, %c0_4, %c0_5] : memref<4x4x4x128xbf16, #tpu.memory_space<vmem>>, vector<1x4x4x128xbf16>
    %3 = vector.shape_cast %2 : vector<1x4x4x128xbf16> to vector<4x4x128xbf16>
    %4 = arith.maximumf %1, %3 : vector<4x4x128xbf16>
    %c2 = arith.constant 2 : index
    %c0_6 = arith.constant 0 : index
    %c0_7 = arith.constant 0 : index
    %c0_8 = arith.constant 0 : index
    %5 = vector.load %arg1[%c2, %c0_6, %c0_7, %c0_8] : memref<4x4x4x128xbf16, #tpu.memory_space<vmem>>, vector<1x4x4x128xbf16>
    %6 = vector.shape_cast %5 : vector<1x4x4x128xbf16> to vector<4x4x128xbf16>
    %c3 = arith.constant 3 : index
    %c0_9 = arith.constant 0 : index
    %c0_10 = arith.constant 0 : index
    %c0_11 = arith.constant 0 : index
    %7 = vector.load %arg1[%c3, %c0_9, %c0_10, %c0_11] : memref<4x4x4x128xbf16, #tpu.memory_space<vmem>>, vector<1x4x4x128xbf16>
    %8 = vector.shape_cast %7 : vector<1x4x4x128xbf16> to vector<4x4x128xbf16>
    %9 = arith.maximumf %6, %8 : vector<4x4x128xbf16>
    %10 = arith.maximumf %4, %9 : vector<4x4x128xbf16>
    %11 = vector.shape_cast %10 : vector<4x4x128xbf16> to vector<16x128xbf16>
    %c0_12 = arith.constant 0 : index
    %c0_13 = arith.constant 0 : index
    %12 = vector.load %arg3[%c0_12, %c0_13] : memref<128x128xbf16, #tpu.memory_space<vmem>>, vector<128x128xbf16>
    %cst = arith.constant dense<0.000000e+00> : vector<16x128xf32>
    %13 = tpu.matmul %11, %12, %cst {dimension_numbers = #tpu.dot_dimension_numbers<[1], [0], [0], [1], [0, 0, 1, 1], [], []>} : vector<16x128xbf16>, vector<128x128xbf16>, vector<16x128xf32> -> vector<16x128xf32>
    %c0_14 = arith.constant 0 : index
    %c0_15 = arith.constant 0 : index
    %c0_16 = arith.constant 0 : index
    %c0_17 = arith.constant 0 : index
    %14 = vector.load %arg2[%c0_14, %c0_15, %c0_16, %c0_17] : memref<1x4x4x128xbf16, #tpu.memory_space<vmem>>, vector<1x4x4x128xbf16>
    %15 = vector.shape_cast %14 : vector<1x4x4x128xbf16> to vector<4x4x128xbf16>
    %16 = vector.shape_cast %15 : vector<4x4x128xbf16> to vector<16x128xbf16>
    %c0_18 = arith.constant 0 : index
    %c0_19 = arith.constant 0 : index
    %17 = vector.load %arg4[%c0_18, %c0_19] : memref<128x128xbf16, #tpu.memory_space<vmem>>, vector<128x128xbf16>
    %cst_20 = arith.constant dense<0.000000e+00> : vector<16x128xf32>
    %18 = tpu.matmul %16, %17, %cst_20 {dimension_numbers = #tpu.dot_dimension_numbers<[1], [0], [0], [1], [0, 0, 1, 1], [], []>} : vector<16x128xbf16>, vector<128x128xbf16>, vector<16x128xf32> -> vector<16x128xf32>
    %19 = arith.addf %13, %18 : vector<16x128xf32>
    %c0_21 = arith.constant 0 : index
    %c0_22 = arith.constant 0 : index
    %20 = vector.load %arg5[%c0_21, %c0_22] : memref<1x128xf32, #tpu.memory_space<vmem>>, vector<1x128xf32>
    %21 = vector.broadcast %20 : vector<1x128xf32> to vector<16x128xf32>
    %22 = arith.mulf %19, %21 : vector<16x128xf32>
    %c0_23 = arith.constant 0 : index
    %c0_24 = arith.constant 0 : index
    %23 = vector.load %arg6[%c0_23, %c0_24] : memref<1x128xf32, #tpu.memory_space<vmem>>, vector<1x128xf32>
    %24 = vector.broadcast %23 : vector<1x128xf32> to vector<16x128xf32>
    %25 = arith.addf %22, %24 : vector<16x128xf32>
    %cst_25 = arith.constant 0.000000e+00 : f32
    %26 = vector.broadcast %cst_25 : f32 to vector<16x128xf32>
    %27 = arith.maximumf %25, %26 : vector<16x128xf32>
    %28 = vector.shape_cast %27 : vector<16x128xf32> to vector<4x4x128xf32>
    %c0_26 = arith.constant 0 : index
    %c0_27 = arith.constant 0 : index
    %c0_28 = arith.constant 0 : index
    %c0_29 = arith.constant 0 : index
    %29 = vector.load %arg7[%c0_26, %c0_27, %c0_28, %c0_29] : memref<1x4x4x128xf32, #tpu.memory_space<vmem>>, vector<1x4x4x128xf32>
    %30 = vector.shape_cast %29 : vector<1x4x4x128xf32> to vector<4x4x128xf32>
    %31 = vector.shape_cast %28 : vector<4x4x128xf32> to vector<1x4x4x128xf32>
    tpu.vector_store %arg7[%c0_26, %c0_27, %c0_28, %c0_29], %31 {strides = array<i32>} : memref<1x4x4x128xf32, #tpu.memory_space<vmem>>, vector<1x4x4x128xf32>,
    return
  }
  func.func @transform_0(%arg0: i32) -> (i32, i32, i32, i32) {
    %c0_i32 = arith.constant 0 : i32
    %c0_i32_0 = arith.constant 0 : i32
    %c0_i32_1 = arith.constant 0 : i32
    %c0_i32_2 = arith.constant 0 : i32
    return %arg0, %c0_i32, %c0_i32_0, %c0_i32_1 : i32, i32, i32, i32
  }
  func.func @transform_1(%arg0: i32) -> (i32, i32, i32, i32) {
    %c0_i32 = arith.constant 0 : i32
    %c0_i32_0 = arith.constant 0 : i32
    %c0_i32_1 = arith.constant 0 : i32
    %c0_i32_2 = arith.constant 0 : i32
    return %arg0, %c0_i32, %c0_i32_0, %c0_i32_1 : i32, i32, i32, i32
  }
  func.func @transform_2(%arg0: i32) -> (i32, i32) {
    %c0_i32 = arith.constant 0 : i32
    %c0_i32_0 = arith.constant 0 : i32
    %c0_i32_1 = arith.constant 0 : i32
    return %c0_i32, %c0_i32_0 : i32, i32
  }
  func.func @transform_3(%arg0: i32) -> (i32, i32) {
    %c0_i32 = arith.constant 0 : i32
    %c0_i32_0 = arith.constant 0 : i32
    %c0_i32_1 = arith.constant 0 : i32
    return %c0_i32, %c0_i32_0 : i32, i32
  }
  func.func @transform_4(%arg0: i32) -> (i32, i32) {
    %c0_i32 = arith.constant 0 : i32
    %c0_i32_0 = arith.constant 0 : i32
    %c0_i32_1 = arith.constant 0 : i32
    return %c0_i32, %c0_i32_0 : i32, i32
  }
  func.func @transform_5(%arg0: i32) -> (i32, i32) {
    %c0_i32 = arith.constant 0 : i32
    %c0_i32_0 = arith.constant 0 : i32
    %c0_i32_1 = arith.constant 0 : i32
    return %c0_i32, %c0_i32_0 : i32, i32
  }
  func.func @transform_6(%arg0: i32) -> (i32, i32, i32, i32) {
    %c0_i32 = arith.constant 0 : i32
    %c0_i32_0 = arith.constant 0 : i32
    %c0_i32_1 = arith.constant 0 : i32
    %c0_i32_2 = arith.constant 0 : i32
    return %arg0, %c0_i32, %c0_i32_0, %c0_i32_1 : i32, i32, i32, i32
  }
}

</mosaic_0001>

<bundles_post_ra>
// kernel: stem_block_forward.5
= control target key start
LH: loop header
LB: loop body
LE: loop exit
PB: predicated region body
PF: predicated region fallthrough
CT: control target
= control target key end

     0   :  { %s687_s1 = inlined_call_operand.vmem [shape: bf16[128,128], index: 1, kind: input, shape index: {}]   ;;  %s688_s0 = inlined_call_operand.vmem [shape: bf16[128,128], index: 0, kind: input, shape index: {}]   ;;  %s689_s2 = inlined_call_operand.vmem [shape: f32[1,128], index: 2, kind: input, shape index: {}]   ;;  %s690_s3 = inlined_call_operand.vmem [shape: f32[1,128], index: 3, kind: input, shape index: {}]   ;;  %s691_s4 = inlined_call_operand.vmem [shape: bf16[128,128], index: 4, kind: output, shape index: {}]  }
   0x1   :  { %v550_v0 = vld [vmem:[%s687_s1] sm:$0xff]   ;;  %v551_v1 = vld [vmem:[%s687_s1 + $0x8] sm:$0xff]   ;;  %v552_v2 = vld [vmem:[%s687_s1 + $0x10] sm:$0xff]  }
   0x2   :  { %502 = vmatprep.subr.bf16.mxu0 %v550_v0  ;;  %534 = vmatprep.subr.bf16.mxu1 %v550_v0  ;;  %v553_v3 = vld [vmem:[%s687_s1 + $0x18] sm:$0xff]   ;;  %v558_v4 = vld [vmem:[%s688_s0] sm:$0xff]   ;;  %v555_v7 = vld [vmem:[%s687_s1 + $0x28] sm:$0xff]  }
   0x3   :  { %503 = vmatpush3.bf16.msra.mxu0 %v550_v0  ;;  %542 = vmatpush3.bf16.msra.mxu1 %v550_v0  ;;  %v559_v5 = vld [vmem:[%s688_s0 + $0x20] sm:$0xff]   ;;  %v556_v8 = vld [vmem:[%s687_s1 + $0x30] sm:$0xff]   ;;  %v557_v9 = vld [vmem:[%s687_s1 + $0x38] sm:$0xff]  }
   0x4   :  { %504 = vmatprep.subr.bf16.mxu0 %v551_v1  ;;  %535 = vmatprep.subr.bf16.mxu1 %v551_v1  ;;  %v554_v6 = vld [vmem:[%s687_s1 + $0x20] sm:$0xff]   ;;  %v560_v10 = vld [vmem:[%s688_s0 + $0x8] sm:$0xff]   ;;  %v562_v12 = vld [vmem:[%s688_s0 + $0x10] sm:$0xff]  }
   0x5   :  { %518 = vmatprep.mubr.bf16.mxu0 %v558_v4  ;;  %526 = vmatprep.mubr.bf16.mxu1 %v559_v5  ;;  %v561_v11 = vld [vmem:[%s688_s0 + $0x28] sm:$0xff]   ;;  %v563_v13 = vld [vmem:[%s688_s0 + $0x30] sm:$0xff]   ;;  %v564_v14 = vld [vmem:[%s688_s0 + $0x18] sm:$0xff]  }
   0x6   :  { %v565_v15 = vld [vmem:[%s688_s0 + $0x38] sm:$0xff]   ;;  %v405_v16 = vld [vmem:[%s689_s2] ss:$0 sm:$0xff] }
   0x7   :  { %505 = vmatpush3.bf16.msra.mxu0 %v551_v1  ;;  %543 = vmatpush3.bf16.msra.mxu1 %v551_v1  ;;  %v645_v18 = vld [vmem:[%s690_s3] ss:$0 sm:$0xff] }
   0x8   :  { %506 = vmatprep.subr.bf16.mxu0 %v552_v2  ;;  %536 = vmatprep.subr.bf16.mxu1 %v552_v2 }
   0xb   :  { %507 = vmatpush3.bf16.msra.mxu0 %v552_v2  ;;  %544 = vmatpush3.bf16.msra.mxu1 %v552_v2 }
   0xc   :  { %508 = vmatprep.subr.bf16.mxu0 %v553_v3  ;;  %537 = vmatprep.subr.bf16.mxu1 %v553_v3 }
   0xf   :  { %509 = vmatpush3.bf16.msra.mxu0 %v553_v3  ;;  %545 = vmatpush3.bf16.msra.mxu1 %v553_v3 }
  0x10   :  { %510 = vmatprep.subr.bf16.mxu0 %v554_v6  ;;  %538 = vmatprep.subr.bf16.mxu1 %v554_v6 }
  0x13   :  { %511 = vmatpush3.bf16.msra.mxu0 %v554_v6  ;;  %546 = vmatpush3.bf16.msra.mxu1 %v554_v6 }
  0x14   :  { %512 = vmatprep.subr.bf16.mxu0 %v555_v7  ;;  %539 = vmatprep.subr.bf16.mxu1 %v555_v7 }
  0x17   :  { %513 = vmatpush3.bf16.msra.mxu0 %v555_v7  ;;  %547 = vmatpush3.bf16.msra.mxu1 %v555_v7 }
  0x18   :  { %514 = vmatprep.subr.bf16.mxu0 %v556_v8  ;;  %540 = vmatprep.subr.bf16.mxu1 %v556_v8 }
  0x1b   :  { %515 = vmatpush3.bf16.msra.mxu0 %v556_v8  ;;  %548 = vmatpush3.bf16.msra.mxu1 %v556_v8 }
  0x1c   :  { %516 = vmatprep.subr.bf16.mxu0 %v557_v9  ;;  %541 = vmatprep.subr.bf16.mxu1 %v557_v9 }
  0x1f   :  { %517 = vmatpush3.bf16.msra.mxu0 %v557_v9  ;;  %549 = vmatpush3.bf16.msra.mxu1 %v557_v9 }
  0x22   :  { %519 = vmatmul.mubr.bf16.vlgmr.msra.gmra.mrb[0].mxu0 %v560_v10  ;;  %527 = vmatmul.mubr.bf16.vlgmr.msra.gmra.mrb[0].mxu1 %v561_v11 }
  0x23   :  { %522 = vmatprep.mubr.bf16.mxu0 %v562_v12  ;;  %530 = vmatprep.mubr.bf16.mxu1 %v563_v13 }
  0x2a   :  { %523 = vmatmul.mubr.bf16.gmra.mrb[4].mxu0 %v564_v14  ;;  %531 = vmatmul.mubr.bf16.gmra.mrb[4].mxu1 %v565_v15 }
  0xf5   :  { %v520_v17 = vpop.f32.mrb[0].mxu0  ;;  %v528_v19 = vpop.f32.mrb[0].mxu1 }
  0xf6   :  { %v252_v20 = vmul.f32 %v520_v17, %v405_v16  ;;  %v260_v21 = vmul.f32 %v528_v19, %v405_v16  ;;  %v180_v22 = vpop.f32.mrb[1].mxu0  ;;  %v212_v23 = vpop.f32.mrb[1].mxu1 }
  0xf7   :  { %v250_v24 = vmul.f32 %v405_v16, %v180_v22  ;;  %v258_v25 = vmul.f32 %v405_v16, %v212_v23  ;;  %v521_v26 = vpop.f32.mrb[2].mxu0  ;;  %v529_v27 = vpop.f32.mrb[2].mxu1 }
  0xf8   :  { %v275_v28 = vadd.f32 %v645_v18, %v252_v20  ;;  %v283_v29 = vadd.f32 %v645_v18, %v260_v21  ;;  %v253_v30 = vmul.f32 %v521_v26, %v405_v16  ;;  %v261_v31 = vmul.f32 %v529_v27, %v405_v16  ;;  %v183_v32 = vpop.f32.mrb[3].mxu0  ;;  %v215_v33 = vpop.f32.mrb[3].mxu1 }
  0xf9   :  { %v273_v34 = vadd.f32 %v645_v18, %v250_v24  ;;  %v281_v35 = vadd.f32 %v645_v18, %v258_v25  ;;  %v251_v36 = vmul.f32 %v405_v16, %v183_v32  ;;  %v259_v37 = vmul.f32 %v405_v16, %v215_v33 }
  0xfa   :  { %v276_v38 = vadd.f32 %v645_v18, %v253_v30  ;;  %v284_v39 = vadd.f32 %v645_v18, %v261_v31  ;;  %v291_v42 = vmax.f32 %v275_v28, 0.0  ;;  %v299_v43 = vmax.f32 %v283_v29, 0.0 }
  0xfb   :  { %v274_v40 = vadd.f32 %v645_v18, %v251_v36  ;;  %v282_v41 = vadd.f32 %v645_v18, %v259_v37  ;;  %v289_v46 = vmax.f32 %v273_v34, 0.0  ;;  %v297_v47 = vmax.f32 %v281_v35, 0.0 }
  0xfc   :  { %v292_v44 = vmax.f32 %v276_v38, 0.0  ;;  %v300_v45 = vmax.f32 %v284_v39, 0.0 }
  0xfd   :  { %v290_v48 = vmax.f32 %v274_v40, 0.0  ;;  %v298_v49 = vmax.f32 %v282_v41, 0.0  ;;  %v524_v50 = vpop.f32.mrb[4].mxu0  ;;  %v532_v51 = vpop.f32.mrb[4].mxu1 }
  0xfe   :  { %v447_v52 = vpack.c.bf16 %v292_v44, %v291_v42  ;;  %v467_v53 = vpack.c.bf16 %v300_v45, %v299_v43  ;;  %v256_v54 = vmul.f32 %v524_v50, %v405_v16  ;;  %v264_v55 = vmul.f32 %v532_v51, %v405_v16  ;;  %v196_v56 = vpop.f32.mrb[5].mxu0  ;;  %v228_v57 = vpop.f32.mrb[5].mxu1 }
  0xff   :  { %v442_v58 = vpack.c.bf16 %v290_v48, %v289_v46  ;;  %v462_v59 = vpack.c.bf16 %v298_v49, %v297_v47  ;;  %v254_v60 = vmul.f32 %v405_v16, %v196_v56  ;;  %v262_v61 = vmul.f32 %v405_v16, %v228_v57  ;;  %v525_v62 = vpop.f32.mrb[6].mxu0  ;;  %v533_v63 = vpop.f32.mrb[6].mxu1 }
 0x100   :  { %479 = vst [vmem:[%s691_s4 + $0x8] sm:$0xff] %v447_v52   ;;  %483 = vst [vmem:[%s691_s4 + $0x28] sm:$0xff] %v467_v53   ;;  %v279_v0 = vadd.f32 %v645_v18, %v256_v54  ;;  %v287_v1 = vadd.f32 %v645_v18, %v264_v55  ;;  %v257_v2 = vmul.f32 %v525_v62, %v405_v16  ;;  %v199_v4 = vpop.f32.mrb[7].mxu0  ;;  %v231_v5 = vpop.f32.mrb[7].mxu1 }
 0x101   :  { %v265_v3 = vmul.f32 %v533_v63, %v405_v16  ;;  %443 = vst [vmem:[%s691_s4] sm:$0xff] %v442_v58   ;;  %482 = vst [vmem:[%s691_s4 + $0x20] sm:$0xff] %v462_v59   ;;  %v277_v6 = vadd.f32 %v645_v18, %v254_v60  ;;  %v285_v7 = vadd.f32 %v645_v18, %v262_v61 }
 0x102   :  { %v255_v8 = vmul.f32 %v405_v16, %v199_v4  ;;  %v263_v9 = vmul.f32 %v405_v16, %v231_v5  ;;  %v280_v10 = vadd.f32 %v645_v18, %v257_v2  ;;  %v295_v14 = vmax.f32 %v279_v0, 0.0 }
 0x103   :  { %v288_v11 = vadd.f32 %v645_v18, %v265_v3  ;;  %v303_v15 = vmax.f32 %v287_v1, 0.0  ;;  %v293_v20 = vmax.f32 %v277_v6, 0.0  ;;  %v301_v21 = vmax.f32 %v285_v7, 0.0 }
 0x104   :  { %v278_v12 = vadd.f32 %v645_v18, %v255_v8  ;;  %v286_v13 = vadd.f32 %v645_v18, %v263_v9  ;;  %v296_v17 = vmax.f32 %v280_v10, 0.0 }
 0x105   :  { %v304_v19 = vmax.f32 %v288_v11, 0.0 }
 0x106   :  { %v294_v22 = vmax.f32 %v278_v12, 0.0  ;;  %v302_v23 = vmax.f32 %v286_v13, 0.0  ;;  %v457_v24 = vpack.c.bf16 %v296_v17, %v295_v14 }
 0x107   :  { %v477_v25 = vpack.c.bf16 %v304_v19, %v303_v15 }
 0x108   :  { %v452_v26 = vpack.c.bf16 %v294_v22, %v293_v20  ;;  %v472_v16 = vpack.c.bf16 %v302_v23, %v301_v21  ;;  %481 = vst [vmem:[%s691_s4 + $0x18] sm:$0xff] %v457_v24  }
 0x109   :  { %485 = vst [vmem:[%s691_s4 + $0x38] sm:$0xff] %v477_v25  }
 0x10a   :  { %480 = vst [vmem:[%s691_s4 + $0x10] sm:$0xff] %v452_v26   ;;  %484 = vst [vmem:[%s691_s4 + $0x30] sm:$0xff] %v472_v16  }

// kernel: stem_block_forward.4
= control target key start
LH: loop header
LB: loop body
LE: loop exit
PB: predicated region body
PF: predicated region fallthrough
CT: control target
= control target key end

     0   :  { %s1951_s15 = smov 0   ;;  %s2316_s0 = inlined_call_operand.vmem [shape: bf16[8,9,9,4], index: 0, kind: input, shape index: {}]   ;;  %s2317_s1 = inlined_call_operand.vmem [shape: bf16[9,4,128], index: 1, kind: input, shape index: {}]   ;;  %s2318_s2 = inlined_call_operand.vmem [shape: f32[1,128], index: 2, kind: input, shape index: {}]   ;;  %s2319_s3 = inlined_call_operand.vmem [shape: f32[1,128], index: 3, kind: input, shape index: {}]   ;;  %s2320_s4 = inlined_call_operand.vmem [shape: bf16[2,8,8,128], index: 4, kind: output, shape index: {}]  }
   0x1 LB: > { %s1957_s16 = sadd.s32 4294967295, %s1924_s15   ;;  %p1528_p0 = scmp.ge.s32.totalorder %s1924_s15, 1  ;;  %s1924_s15 = sphi %s1951_s15, %s14_s15  }
   0x2   : > { %p164_p1 = scmp.lt.s32.totalorder %s1924_s15, 3 }
   0x4   : > { %p165_p2 = pnand %p1528_p0, %p164_p1 }
   0x5   : > { %v1566_v0 = vld [vmem:[%s2317_s1 + $0x2] sm:$0x3] (!%p165_p2)  ;;  %vm294_vm0 = vcmask (!%p165_p2), 1041408   ;;  %v1967_v1 = vld [vmem:[%s2317_s1 + $0x8] sm:$0x3] (!%p165_p2)  ;;  %s1529_s21 = sshll.u32 (!%p165_p2), %s1957_s16, 2 }
   0x6   : > { %168 = sbr.rel (%p165_p2) target bundleno = 323 (0x143), region = 36  ;;  %1875 = vmatprep.subr.msk.bf16.mxu1 (!%p165_p2), %vm294_vm0, %v1566_v0  ;;  %1879 = vmatprep.subr.msk.bf16.mxu0 (!%p165_p2), %vm294_vm0, %v1967_v1  ;;  %v296_v2 = vsel (!%p165_p2), %vm294_vm0, %v1566_v0, 0  ;;  %v1976_v3 = vsel (!%p165_p2), %vm294_vm0, %v1967_v1, 0  ;;  %p192_p3 = scmp.lt.s32.totalorder (!%p165_p2), %s1529_s21, 7  ;;  %v258_v4 = vld [vmem:[%s2317_s1] sm:$0x3] (!%p165_p2) }
   0x7   : > { %1720 = vmatpush3.bf16.msra.mxu1 (!%p165_p2), %v296_v2  ;;  %1760 = vmatpush3.bf16.msra.mxu0 (!%p165_p2), %v1976_v3  ;;  %v1610_v5 = vld [vmem:[%s2317_s1 + $0xa] sm:$0x3] (!%p165_p2)  ;;  %v1619_v6 = vld [vmem:[%s2317_s1 + $0xc] sm:$0x3] (!%p165_p2)  ;;  %v1583_v7 = vld [vmem:[%s2317_s1 + $0x4] sm:$0x3] (!%p165_p2) }
   0x8   : > { %1876 = vmatprep.subr.msk.bf16.mxu1 (!%p165_p2), %vm294_vm0, %v258_v4  ;;  %1881 = vmatprep.subr.msk.bf16.mxu0 (!%p165_p2), %vm294_vm0, %v1610_v5  ;;  %v1996_v8 = vld [vmem:[%s2317_s1 + $0xe] sm:$0x3] (!%p165_p2)  ;;  %vm281_vm1 = vcmask (!%p165_p2), 31744   ;;  %v396_v9 = vsel (!%p165_p2), %vm294_vm0, %v258_v4, 0  ;;  %v1039_v10 = vsel (!%p165_p2), %vm294_vm0, %v1610_v5, 0  ;;  %v2006_v11 = vsel (!%p165_p2), %vm294_vm0, %v1619_v6, 0 }
   0x9   : > { %v2009_v12 = vsel (!%p165_p2), %vm294_vm0, %v1583_v7, 0  ;;  %v2013_v13 = vsel (!%p165_p2), %vm294_vm0, %v1996_v8, 0  ;;  %vm463_vm2 = vsmask.f32 (!%p165_p2), 3328  ;;  %vm464_vm3 = vsmask.f32 (!%p165_p2), 7440 }
   0xa   : > { %vm2083_vm4 = vmor (!%p165_p2), %vm463_vm2, %vm464_vm3  ;;  %v1592_v2 = vld [vmem:[%s2317_s1 + $0x6] sm:$0x3] (!%p165_p2)  ;;  %p198_p4 = scmp.lt.s32.totalorder (!%p165_p2), %s1957_s16, 1 }
   0xd   : > { %s2324_s21 = smov (!%p192_p3, %s1529_s21), 7  ;;  %s2326_s16 = smov (!%p198_p4, %s1957_s16), 1 }
   0xe   : > { %s1885_s6 = smul.u32 72, %s2324_s21  ;;  %s1650_s20 = sshll.u32 %s2326_s16, 5 }
   0xf   : > { %s202_s23 = scalar_lea.vmem %s2320_s4, %s1650_s20 }
  0x10   : > { %s2002_s9 = scalar_lea.vmem %s2316_s0, %s1885_s6 }
  0x11   : > { %v1533_v14 = vld [vmem:[%s2002_s9 + $0x48] sm:$0xf]  ;;  %v2017_v15 = vld [vmem:[%s2002_s9 + $0x50] sm:$0xf]  ;;  %v2020_v16 = vld [vmem:[%s2002_s9 + $0x58] sm:$0xf] }
  0x12   : > { %v2023_v17 = vld [vmem:[%s2002_s9 + $0x60] sm:$0xf]  ;;  %v2026_v18 = vld [vmem:[%s2002_s9 + $0x68] sm:$0xf]  ;;  %v1567_v19 = vcombine.low %v1533_v14, %v2017_v15  ;;  %v2035_v23 = vld [vmem:[%s2002_s9 + $0x70] sm:$0xf] }
  0x13   : > { %v1568_v20 = vcombine.low %v2020_v16, %v2023_v17  ;;  %v1898_v21 = vld [vmem:[%s2002_s9 + $0xd8] ss:$8 sps:$4 sm:$0xff]   ;;  %v1899_v22 = vld [vmem:[%s2002_s9 + $0xe8] ss:$8 sps:$4 sm:$0xff]   ;;  %v1569_v24 = vcombine.low %v2026_v18, %v2035_v23  ;;  %v1543_v28 = vld [vmem:[%s2002_s9 + $0x94] sm:$0x1] }
  0x14   : > { %1721 = vmatprep.mubr.msk.bf16.mxu1 %vm281_vm1, %v1567_v19  ;;  %1761 = vmatprep.mubr.msk.bf16.mxu0 %vm281_vm1, %v1898_v21  ;;  %v2042_v25 = vld [vmem:[%s2002_s9 + $0x78] sm:$0xf]  ;;  %v2045_v26 = vld [vmem:[%s2002_s9 + $0x80] sm:$0xf]  ;;  %v2048_v27 = vld [vmem:[%s2002_s9 + $0x90] sm:$0xf] }
  0x15   : > { %1722 = vmatmul.mubr.msk.bf16.vlgmr.msra.gmra.mrb[0].mxu1 %vm281_vm1, %v1568_v20  ;;  %1762 = vmatmul.mubr.msk.bf16.vlgmr.msra.gmra.mrb[0].mxu0 %vm281_vm1, %v1899_v22  ;;  %v2053_v29 = vld [vmem:[%s2002_s9 + $0x98] sm:$0xf]  ;;  %v1545_v30 = vld [vmem:[%s2002_s9 + $0x9c] sm:$0x1]  ;;  %v901_v31 = vshrl.u32 %v2048_v27, 16  ;;  %v904_v32 = vshll.u32 %v2048_v27, 16  ;;  %v1570_v36 = vcombine.low %v2042_v25, %v2045_v26 }
  0x16   : > { %1730 = vmatpush3.bf16.msra.mxu1 %v396_v9  ;;  %1770 = vmatpush3.bf16.msra.mxu0 %v1039_v10  ;;  %v910_v33 = vshll.u32 %v1543_v28, 16  ;;  %v915_v34 = vshrl.u32 %v2053_v29, 16  ;;  %v2061_v35 = vld [vmem:[%s2002_s9 + $0xa0] sm:$0xf]  ;;  %v918_v37 = vshll.u32 %v2053_v29, 16  ;;  %v924_v38 = vshll.u32 %v1545_v30, 16 }
  0x17   : > { %1725 = vmatprep.mubr.msk.bf16.mxu1 %vm281_vm1, %v1569_v24  ;;  %1882 = vmatprep.subr.msk.bf16.mxu0 %vm294_vm0, %v1619_v6  ;;  %v1547_v39 = vld [vmem:[%s2002_s9 + $0xa4] sm:$0x1]  ;;  %v2069_v40 = vld [vmem:[%s2002_s9 + $0xa8] sm:$0xf]  ;;  %v903_v41 = vrot.slane %v901_v31, 4  ;;  %v906_v42 = vrot.slane %v904_v32, 5 }
  0x18   : > { %1877 = vmatprep.subr.msk.bf16.mxu1 %vm294_vm0, %v1583_v7  ;;  %v912_v43 = vrot.slane %v910_v33, 5  ;;  %v917_v44 = vrot.slane %v915_v34, 4  ;;  %v1549_v45 = vld [vmem:[%s2002_s9 + $0xac] sm:$0x1]  ;;  %v920_v46 = vrot.slane %v918_v37, 5  ;;  %v926_v47 = vrot.slane %v924_v38, 5 }
  0x19   : > { %v929_v48 = vshrl.u32 %v2061_v35, 16  ;;  %v932_v49 = vshll.u32 %v2061_v35, 16  ;;  %v204_v50 = vld [vmem:[%s2002_s9] sm:$0xf]  ;;  %v907_v51 = vor.u32 %v906_v42, %v903_v41  ;;  %v938_v52 = vshll.u32 %v1547_v39, 16 }
  0x1a   : > { %v943_v53 = vshrl.u32 %v2069_v40, 16  ;;  %v946_v54 = vshll.u32 %v2069_v40, 16  ;;  %v2079_v55 = vld [vmem:[%s2002_s9 + $0x8] sm:$0xf]  ;;  %v921_v57 = vor.u32 %v920_v46, %v917_v44  ;;  %v952_v60 = vshll.u32 %v1549_v45, 16 }
  0x1b   : > { %v931_v58 = vrot.slane %v929_v48, 4  ;;  %v934_v59 = vrot.slane %v932_v49, 5  ;;  %v908_v61 = vrot.slane %v907_v51, 4  ;;  %v940_v62 = vrot.slane %v938_v52, 5  ;;  %v2093_v9 = vld [vmem:[%s2002_s9 + $0x10] sm:$0xf] }
  0x1c   : > { %v945_v63 = vrot.slane %v943_v53, 4  ;;  %v948_v0 = vrot.slane %v946_v54, 5  ;;  %v922_v4 = vrot.slane %v921_v57, 4  ;;  %v954_v6 = vrot.slane %v952_v60, 5  ;;  %v2098_v21 = vld [vmem:[%s2002_s9 + $0x18] sm:$0xf] }
  0x1d   : > { %1726 = vmatmul.mubr.msk.bf16.gmra.mrb[4].mxu1 %vm281_vm1, %v1570_v36  ;;  %v935_v5 = vor.u32 %v934_v59, %v931_v58  ;;  %v1575_v7 = vcombine.low %v204_v50, %v2079_v55  ;;  %v913_v10 = vsel %vm2083_vm4, %v908_v61, %v912_v43  ;;  %v467_v19 = vshrl.u32 %v204_v50, 16  ;;  %v2101_v22 = vld [vmem:[%s2002_s9 + $0xb0] sm:$0xf]  ;;  %v1551_v30 = vld [vmem:[%s2002_s9 + $0xb4] sm:$0x1] }
  0x1e   : > { %v949_v14 = vor.u32 %v948_v0, %v945_v63  ;;  %v470_v20 = vshll.u32 %v204_v50, 16  ;;  %v927_v24 = vsel %vm2083_vm4, %v922_v4, %v926_v47  ;;  %v2108_v31 = vld [vmem:[%s2002_s9 + $0xb8] sm:$0xf]  ;;  %v2111_v32 = vsel %vm294_vm0, %v1592_v2, 0  ;;  %v1553_v38 = vld [vmem:[%s2002_s9 + $0xbc] sm:$0x1] }
  0x1f   : > { %v936_v28 = vrot.slane %v935_v5, 4  ;;  %1731 = vmatprep.mubr.msk.bf16.mxu1 %vm281_vm1, %v1575_v7  ;;  %v1611_v33 = vcombine.low %v913_v10, %v927_v24  ;;  %v481_v36 = vshrl.u32 %v2079_v55, 16  ;;  %v484_v37 = vshll.u32 %v2079_v55, 16  ;;  %v2125_v44 = vld [vmem:[%s2002_s9 + $0xc0] sm:$0xf] }
  0x20   : > { %v950_v34 = vrot.slane %v949_v14, 4  ;;  %v2118_v41 = vrot.slane %v467_v19, 4  ;;  %v2120_v42 = vrot.slane %v470_v20, 5  ;;  %v1576_v43 = vcombine.low %v2093_v9, %v2098_v21  ;;  %v1555_v45 = vld [vmem:[%s2002_s9 + $0xc4] sm:$0x1] }
  0x21   : > { %v941_v39 = vsel %vm2083_vm4, %v936_v28, %v940_v62  ;;  %1771 = vmatprep.mubr.msk.bf16.mxu0 %vm281_vm1, %v1611_v33  ;;  %v495_v47 = vshrl.u32 %v2093_v9, 16  ;;  %v498_v48 = vshll.u32 %v2093_v9, 16  ;;  %v957_v49 = vshrl.u32 %v2101_v22, 16  ;;  %v2135_v50 = vld [vmem:[%s2002_s9 + $0xc8] sm:$0xf] }
  0x22   : > { %v955_v46 = vsel %vm2083_vm4, %v950_v34, %v954_v6  ;;  %v960_v52 = vshll.u32 %v2101_v22, 16  ;;  %v966_v53 = vshll.u32 %v1551_v30, 16  ;;  %v971_v54 = vshrl.u32 %v2108_v31, 16  ;;  %v1557_v57 = vld [vmem:[%s2002_s9 + $0xcc] sm:$0x1] }
  0x23   : > { %v1612_v51 = vcombine.low %v941_v39, %v955_v46  ;;  %v959_v58 = vrot.slane %v957_v49, 4  ;;  %v974_v59 = vshll.u32 %v2108_v31, 16  ;;  %v980_v60 = vshll.u32 %v1553_v38, 16  ;;  %v2144_v62 = vld [vmem:[%s2002_s9 + $0x20] sm:$0xf] }
  0x24   : > { %v985_v61 = vshrl.u32 %v2125_v44, 16  ;;  %v962_v63 = vrot.slane %v960_v52, 5  ;;  %v968_v0 = vrot.slane %v966_v53, 5  ;;  %v973_v4 = vrot.slane %v971_v54, 4  ;;  %v2150_v6 = vld [vmem:[%s2002_s9 + $0x28] sm:$0xf] }
  0x25   : > { %1732 = vmatmul.mubr.msk.bf16.vlgmr.msra.gmra.mrb[0].mxu1 %vm281_vm1, %v1576_v43  ;;  %1772 = vmatmul.mubr.msk.bf16.vlgmr.msra.gmra.mrb[0].mxu0 %vm281_vm1, %v1612_v51  ;;  %v988_v5 = vshll.u32 %v2125_v44, 16  ;;  %v976_v7 = vrot.slane %v974_v59, 5  ;;  %v982_v10 = vrot.slane %v980_v60, 5  ;;  %v994_v19 = vshll.u32 %v1555_v45, 16  ;;  %v2161_v38 = vld [vmem:[%s2002_s9 + $0x30] sm:$0xf] }
  0x26   : > { %1740 = vmatpush3.bf16.msra.mxu1 %v2009_v12  ;;  %1780 = vmatpush3.bf16.msra.mxu0 %v2006_v11  ;;  %v987_v14 = vrot.slane %v985_v61, 4  ;;  %v963_v20 = vor.u32 %v962_v63, %v959_v58  ;;  %v999_v12 = vshrl.u32 %v2135_v50, 16  ;;  %v1002_v28 = vshll.u32 %v2135_v50, 16  ;;  %v2164_v46 = vld [vmem:[%s2002_s9 + $0x38] sm:$0xf] }
  0x27   : > { %1878 = vmatprep.subr.msk.bf16.mxu1 %vm294_vm0, %v1592_v2  ;;  %v990_v24 = vrot.slane %v988_v5, 5  ;;  %1883 = vmatprep.subr.msk.bf16.mxu0 %vm294_vm0, %v1996_v8  ;;  %v977_v30 = vor.u32 %v976_v7, %v973_v4  ;;  %v996_v33 = vrot.slane %v994_v19, 5  ;;  %v1008_v34 = vshll.u32 %v1557_v57, 16  ;;  %v205_v4 = vld [vmem:[%s2002_s9 + $0x4] sm:$0x1] }
  0x28   : > { %v1577_v11 = vcombine.low %v2144_v62, %v2150_v6  ;;  %v964_v39 = vrot.slane %v963_v20, 4  ;;  %v1001_v2 = vrot.slane %v999_v12, 4  ;;  %v1004_v45 = vrot.slane %v1002_v28, 5  ;;  %v207_v5 = vld [vmem:[%s2002_s9 + $0xc] sm:$0x1] }
  0x29   : > { %v991_v43 = vor.u32 %v990_v24, %v987_v14  ;;  %v509_v49 = vshrl.u32 %v2098_v21, 16  ;;  %v512_v8 = vshll.u32 %v2098_v21, 16  ;;  %v978_v51 = vrot.slane %v977_v30, 4  ;;  %v209_v28 = vld [vmem:[%s2002_s9 + $0x14] sm:$0x1] }
  0x2a   : > { %v1010_v52 = vrot.slane %v1008_v34, 5  ;;  %1735 = vmatprep.mubr.msk.bf16.mxu1 %vm281_vm1, %v1577_v11  ;;  %v969_v53 = vsel %vm2083_vm4, %v964_v39, %v968_v0  ;;  %v1005_v57 = vor.u32 %v1004_v45, %v1001_v2  ;;  %v523_v58 = vshrl.u32 %v2144_v62, 16  ;;  %v1541_v56 = vld [vmem:[%s2002_s9 + $0x88] sm:$0xf] }
  0x2b   : > { %v992_v54 = vrot.slane %v991_v43, 4  ;;  %v983_v59 = vsel %vm2083_vm4, %v978_v51, %v982_v10  ;;  %v526_v60 = vshll.u32 %v2144_v62, 16  ;;  %v537_v61 = vshrl.u32 %v2150_v6, 16  ;;  %v211_v43 = vld [vmem:[%s2002_s9 + $0x1c] sm:$0x1] }
  0x2c   : > { %v1578_v63 = vcombine.low %v2161_v38, %v2164_v46  ;;  %v1613_v7 = vcombine.low %v969_v53, %v983_v59  ;;  %v1006_v14 = vrot.slane %v1005_v57, 4  ;;  %v540_v19 = vshll.u32 %v2150_v6, 16 }
  0x2d   : > { %v997_v0 = vsel %vm2083_vm4, %v992_v54, %v996_v33  ;;  %v1621_v10 = vcombine.low %v2098_v21, %v2144_v62  ;;  %v551_v20 = vshrl.u32 %v2161_v38, 16  ;;  %v554_v24 = vshll.u32 %v2161_v38, 16 }
  0x2e   : > { %1736 = vmatmul.mubr.msk.bf16.gmra.mrb[4].mxu1 %vm281_vm1, %v1578_v63  ;;  %v1620_v12 = vcombine.low %v2079_v55, %v2093_v9  ;;  %1775 = vmatprep.mubr.msk.bf16.mxu0 %vm281_vm1, %v1613_v7  ;;  %v1011_v30 = vsel %vm2083_vm4, %v1006_v14, %v1010_v52  ;;  %v473_v33 = vor.u32 %v2120_v42, %v2118_v41  ;;  %v476_v34 = vshll.u32 %v205_v4, 16  ;;  %v2212_v4 = vld [vmem:[%s2002_s9 + $0x40] sm:$0xf] }
  0x2f   : > { %v483_v21 = vrot.slane %v481_v36, 4  ;;  %v1614_v62 = vcombine.low %v997_v0, %v1011_v30  ;;  %v486_v11 = vrot.slane %v484_v37, 5  ;;  %v490_v39 = vshll.u32 %v207_v5, 16  ;;  %v213_v0 = vld [vmem:[%s2002_s9 + $0x24] sm:$0x1] }
  0x30   : > { %v497_v2 = vrot.slane %v495_v47, 4  ;;  %v474_v45 = vrot.slane %v473_v33, 4  ;;  %v478_v51 = vrot.slane %v476_v34, 5  ;;  %v500_v52 = vrot.slane %v498_v48, 5 }
  0x31   : > { %v504_v41 = vshll.u32 %v209_v28, 16  ;;  %1776 = vmatmul.mubr.msk.bf16.gmra.mrb[4].mxu0 %vm281_vm1, %v1614_v62  ;;  %v487_v42 = vor.u32 %v486_v11, %v483_v21  ;;  %v492_v36 = vrot.slane %v490_v39, 5  ;;  %v511_v53 = vrot.slane %v509_v49, 4  ;;  %v215_v28 = vld [vmem:[%s2002_s9 + $0x2c] sm:$0x1] }
  0x32   : > { %v514_v55 = vrot.slane %v512_v8, 5  ;;  %v565_v37 = vshrl.u32 %v2164_v46, 16  ;;  %1781 = vmatprep.mubr.msk.bf16.mxu0 %vm281_vm1, %v1620_v12  ;;  %v501_v47 = vor.u32 %v500_v52, %v497_v2  ;;  %v518_v57 = vshll.u32 %v211_v43, 16 }
  0x33   : > { %v506_v54 = vrot.slane %v504_v41, 5  ;;  %v568_v9 = vshll.u32 %v2164_v46, 16  ;;  %v479_v48 = vsel %vm2083_vm4, %v474_v45, %v478_v51  ;;  %v488_v59 = vrot.slane %v487_v42, 4  ;;  %v219_v51 = vld [vmem:[%s2002_s9 + $0x3c] sm:$0x1] }
  0x34   : > { %v515_v63 = vor.u32 %v514_v55, %v511_v53  ;;  %v502_v49 = vrot.slane %v501_v47, 4  ;;  %v520_v8 = vrot.slane %v518_v57, 5  ;;  %v1622_v5 = vcombine.low %v2150_v6, %v2161_v38  ;;  %v217_v38 = vld [vmem:[%s2002_s9 + $0x34] sm:$0x1]  ;;  %v1637_v55 = vld [vmem:[%s2317_s1 + $0x10] sm:$0x3] }
  0x35   : > { %v1307_v7 = vshrl.u32 %v2212_v4, 16  ;;  %v2220_v14 = vsel %vm2083_vm4, %v488_v59, %v492_v36  ;;  %v525_v30 = vrot.slane %v523_v58, 4  ;;  %v528_v33 = vrot.slane %v526_v60, 5 }
  0x36   : > { %v516_v12 = vrot.slane %v515_v63, 4  ;;  %v1584_v34 = vcombine.low %v479_v48, %v2220_v14  ;;  %v2226_v21 = vsel %vm2083_vm4, %v502_v49, %v506_v54  ;;  %v1310_v6 = vshll.u32 %v2212_v4, 16 }
  0x37   : > { %v1309_v62 = vrot.slane %v1307_v7, 4  ;;  %v529_v39 = vor.u32 %v528_v33, %v525_v30  ;;  %v532_v43 = vshll.u32 %v213_v0, 16  ;;  %v539_v2 = vrot.slane %v537_v61, 4 }
  0x38   : > { %v2232_v11 = vsel %vm2083_vm4, %v516_v12, %v520_v8  ;;  %1741 = vmatprep.mubr.msk.bf16.mxu1 %vm281_vm1, %v1584_v34  ;;  %v542_v60 = vrot.slane %v540_v19, 5  ;;  %v546_v45 = vshll.u32 %v215_v28, 16  ;;  %v553_v52 = vrot.slane %v551_v20, 4 }
  0x39   : > { %v1585_v58 = vcombine.low %v2226_v21, %v2232_v11  ;;  %1782 = vmatmul.mubr.msk.bf16.vlgmr.msra.gmra.mrb[0].mxu0 %vm281_vm1, %v1621_v10  ;;  %v530_v41 = vrot.slane %v529_v39, 4  ;;  %v534_v42 = vrot.slane %v532_v43, 5  ;;  %v556_v36 = vrot.slane %v554_v24, 5 }
  0x3a   : > { %v560_v53 = vshll.u32 %v217_v38, 16  ;;  %1790 = vmatpush3.bf16.msra.mxu0 %v2013_v13  ;;  %v543_v61 = vor.u32 %v542_v60, %v539_v2  ;;  %v548_v19 = vrot.slane %v546_v45, 5  ;;  %v567_v47 = vrot.slane %v565_v37, 4  ;;  %1785 = vmatprep.mubr.msk.bf16.mxu0 %vm281_vm1, %v1622_v5  ;;  %v221_v37 = vld [vmem:[%s2002_s9 + $0x44] sm:$0x1] }
  0x3b   : > { %1742 = vmatmul.mubr.msk.bf16.vlgmr.msra.gmra.mrb[0].mxu1 %vm281_vm1, %v1585_v58  ;;  %v570_v54 = vrot.slane %v568_v9, 5  ;;  %v1312_v10 = vrot.slane %v1310_v6, 5  ;;  %v557_v20 = vor.u32 %v556_v36, %v553_v52  ;;  %v574_v57 = vshll.u32 %v219_v51, 16  ;;  %1884 = vmatprep.subr.msk.bf16.mxu0 %vm294_vm0, %v1637_v55 }
  0x3c   : > { %1750 = vmatpush3.bf16.msra.mxu1 %v2111_v32  ;;  %v562_v24 = vrot.slane %v560_v53, 5  ;;  %v535_v48 = vsel %vm2083_vm4, %v530_v41, %v534_v42  ;;  %v544_v59 = vrot.slane %v543_v61, 4  ;;  %v1623_v32 = vcombine.low %v2164_v46, %v2212_v4 }
  0x3d   : > { %v571_v13 = vor.u32 %v570_v54, %v567_v47  ;;  %1880 = vmatprep.subr.msk.bf16.mxu1 %vm294_vm0, %v1967_v1  ;;  %v558_v9 = vrot.slane %v557_v20, 4  ;;  %v576_v63 = vrot.slane %v574_v57, 5  ;;  %v1629_v49 = vcombine.low %v2017_v15, %v2020_v16 }
  0x3e   : > { %v549_v8 = vsel %vm2083_vm4, %v544_v59, %v548_v19  ;;  %v1313_v12 = vor.u32 %v1312_v10, %v1309_v62  ;;  %v1316_v28 = vshll.u32 %v221_v37, 16  ;;  %v1593_v46 = vcombine.low %v2048_v27, %v2053_v29 }
  0x3f   : > { %v572_v5 = vrot.slane %v571_v13, 4  ;;  %v1586_v7 = vcombine.low %v535_v48, %v549_v8  ;;  %v563_v0 = vsel %vm2083_vm4, %v558_v9, %v562_v24  ;;  %v1630_v27 = vcombine.low %v2023_v17, %v2026_v18 }
  0x40   : > { %v1314_v16 = vrot.slane %v1313_v12, 4  ;;  %v1318_v4 = vrot.slane %v1316_v28, 5  ;;  %v1631_v29 = vcombine.low %v2035_v23, %v2042_v25  ;;  %v1340_v33 = vsel %vm294_vm0, %v1637_v55, 0  ;;  %v1916_v25 = vld [vmem:[%s2002_s9 + $0xf8] ss:$8 sps:$4 sm:$0xff]  }
  0x41   : > { %v577_v1 = vsel %vm2083_vm4, %v572_v5, %v576_v63  ;;  %1786 = vmatmul.mubr.msk.bf16.gmra.mrb[4].mxu0 %vm281_vm1, %v1623_v32  ;;  %1745 = vmatprep.mubr.msk.bf16.mxu1 %vm281_vm1, %v1586_v7  ;;  %v1594_v34 = vcombine.low %v2061_v35, %v2069_v40  ;;  %v1595_v62 = vcombine.low %v2101_v22, %v2108_v31 }
  0x42   : > { %v1587_v15 = vcombine.low %v563_v0, %v577_v1  ;;  %1791 = vmatprep.mubr.msk.bf16.mxu0 %vm281_vm1, %v1629_v49  ;;  %v1319_v30 = vsel %vm2083_vm4, %v1314_v16, %v1318_v4  ;;  %v1632_v17 = vcombine.low %v2045_v26, %v1541_v56  ;;  %v1638_v18 = vcombine.low %v2220_v14, %v2226_v21  ;;  %v1917_v26 = vld [vmem:[%s2002_s9 + $0x108] ss:$8 sps:$4 sm:$0xff]   ;;  %v1646_v21 = vld [vmem:[%s2318_s2] ss:$0 sm:$0xff] }
  0x43   : > { %v1596_v23 = vcombine.low %v2125_v44, %v2135_v50  ;;  %v1640_v35 = vcombine.low %v549_v8, %v563_v0  ;;  %v1641_v40 = vcombine.low %v577_v1, %v1319_v30 }
  0x44   : > { %1746 = vmatmul.mubr.msk.bf16.gmra.mrb[4].mxu1 %vm281_vm1, %v1587_v15 }
  0x45   : > { %1751 = vmatprep.mubr.msk.bf16.mxu1 %vm281_vm1, %v1593_v46 }
  0x49   : > { %1792 = vmatmul.mubr.msk.bf16.vlgmr.msra.gmra.mrb[0].mxu0 %vm281_vm1, %v1630_v27 }
  0x4a   : > { %1800 = vmatpush3.bf16.msra.mxu0 %v1340_v33  ;;  %1795 = vmatprep.mubr.msk.bf16.mxu0 %vm281_vm1, %v1631_v29 }
  0x4c   : > { %1752 = vmatmul.mubr.msk.bf16.vlgmr.msra.gmra.mrb[0].mxu1 %vm281_vm1, %v1594_v34 }
  0x4d   : > { %1810 = vmatpush3.bf16.msra.mxu1 %v1976_v3  ;;  %1755 = vmatprep.mubr.msk.bf16.mxu1 %vm281_vm1, %v1595_v62  ;;  %v1639_v3 = vcombine.low %v2232_v11, %v535_v48  ;;  %v1647_v11 = vld [vmem:[%s2319_s3] ss:$0 sm:$0xff] }
  0x51   : > { %1796 = vmatmul.mubr.msk.bf16.gmra.mrb[4].mxu0 %vm281_vm1, %v1632_v17 }
  0x52   : > { %1801 = vmatprep.mubr.msk.bf16.mxu0 %vm281_vm1, %v1638_v18 }
  0x54   : > { %1756 = vmatmul.mubr.msk.bf16.gmra.mrb[4].mxu1 %vm281_vm1, %v1596_v23 }
  0x55   : > { %1765 = vmatprep.mubr.msk.bf16.mxu1 %vm281_vm1, %v1916_v25 }
  0x59   : > { %1802 = vmatmul.mubr.msk.bf16.vlgmr.msra.gmra.mrb[0].mxu0 %vm281_vm1, %v1639_v3 }
  0x5a   : > { %1805 = vmatprep.mubr.msk.bf16.mxu0 %vm281_vm1, %v1640_v35 }
  0x60   : > { %1766 = vmatmul.mubr.msk.bf16.vlgmr.msra.gmra.mrb[4].mxu1 %vm281_vm1, %v1917_v26 }
  0x61   : > { %1806 = vmatmul.mubr.msk.bf16.gmra.mrb[4].mxu0 %vm281_vm1, %v1641_v40 }
 0x11f   : > { %v1753_v22 = vpop.f32.mrb[0].mxu1 }
 0x120   : > { %v751_v31 = vpop.f32.mrb[1].mxu1 }
 0x121   : > { %v1754_v44 = vpop.f32.mrb[2].mxu1 }
 0x122   : > { %v754_v50 = vpop.f32.mrb[3].mxu1 }
 0x12c   : > { %v1803_v14 = vpop.f32.mrb[0].mxu0 }
 0x12d   : > { %v1811_v6 = vadd.f32 %v1803_v14, %v1753_v22  ;;  %v1376_v38 = vpop.f32.mrb[1].mxu0 }
 0x12e   : > { %v1812_v39 = vadd.f32 %v1376_v38, %v751_v31  ;;  %v1804_v43 = vpop.f32.mrb[2].mxu0 }
 0x12f   : > { %v1424_v2 = vmul.f32 %v1811_v6, %v1646_v21  ;;  %v1813_v58 = vadd.f32 %v1804_v43, %v1754_v44  ;;  %v1379_v60 = vpop.f32.mrb[3].mxu0 }
 0x130   : > { %v1422_v45 = vmul.f32 %v1812_v39, %v1646_v21  ;;  %v1814_v51 = vadd.f32 %v1379_v60, %v754_v50 }
 0x131   : > { %v1439_v52 = vadd.f32 %v1647_v11, %v1424_v2  ;;  %v1425_v41 = vmul.f32 %v1813_v58, %v1646_v21 }
 0x132   : > { %v1437_v42 = vadd.f32 %v1647_v11, %v1422_v45  ;;  %v1423_v36 = vmul.f32 %v1814_v51, %v1646_v21 }
 0x133   : > { %v1767_v53 = vpop.f32.mrb[4].mxu1  ;;  %v1440_v55 = vadd.f32 %v1647_v11, %v1425_v41  ;;  %v1447_v10 = vmax.f32 %v1439_v52, 0.0 }
 0x134   : > { %v877_v61 = vpop.f32.mrb[5].mxu1  ;;  %v1438_v19 = vadd.f32 %v1647_v11, %v1423_v36  ;;  %v1807_v47 = vpop.f32.mrb[4].mxu0  ;;  %v1445_v59 = vmax.f32 %v1437_v42, 0.0 }
 0x135   : > { %v1768_v54 = vpop.f32.mrb[6].mxu1  ;;  %v1448_v20 = vmax.f32 %v1440_v55, 0.0  ;;  %v1815_v24 = vadd.f32 %v1807_v47, %v1767_v53  ;;  %v1392_v57 = vpop.f32.mrb[5].mxu0 }
 0x136   : > { %v880_v48 = vpop.f32.mrb[7].mxu1  ;;  %v1446_v13 = vmax.f32 %v1438_v19, 0.0  ;;  %v1816_v37 = vadd.f32 %v1392_v57, %v877_v61  ;;  %v1808_v32 = vpop.f32.mrb[6].mxu0 }
 0x137   : > { %v1659_v9 = vpack.c.bf16 %v1448_v20, %v1447_v10  ;;  %v1428_v63 = vmul.f32 %v1815_v24, %v1646_v21  ;;  %v1817_v49 = vadd.f32 %v1808_v32, %v1768_v54  ;;  %v1395_v8 = vpop.f32.mrb[7].mxu0 }
 0x138   : > { %v1654_v5 = vpack.c.bf16 %v1446_v13, %v1445_v59  ;;  %v1426_v7 = vmul.f32 %v1816_v37, %v1646_v21  ;;  %v1818_v0 = vadd.f32 %v1395_v8, %v880_v48 }
 0x139   : > { %1671 = vst [vmem:[%s202_s23 + $0x8] sm:$0xff] %v1659_v9   ;;  %v1443_v12 = vadd.f32 %v1647_v11, %v1428_v63  ;;  %v1429_v28 = vmul.f32 %v1817_v49, %v1646_v21 }
 0x13a   : > { %1655 = vst [vmem:[%s202_s23] sm:$0xff] %v1654_v5   ;;  %v1441_v1 = vadd.f32 %v1647_v11, %v1426_v7  ;;  %v1427_v46 = vmul.f32 %v1818_v0, %v1646_v21 }
 0x13b   : > { %v1444_v15 = vadd.f32 %v1647_v11, %v1429_v28  ;;  %v1451_v4 = vmax.f32 %v1443_v12, 0.0 }
 0x13c   : > { %v1442_v16 = vadd.f32 %v1647_v11, %v1427_v46  ;;  %v1449_v27 = vmax.f32 %v1441_v1, 0.0 }
 0x13d   : > { %v1452_v30 = vmax.f32 %v1444_v15, 0.0 }
 0x13e   : > { %v1450_v29 = vmax.f32 %v1442_v16, 0.0 }
 0x13f   : > { %v1669_v33 = vpack.c.bf16 %v1452_v30, %v1451_v4 }
 0x140   : > { %v1664_v34 = vpack.c.bf16 %v1450_v29, %v1449_v27 }
 0x141   : > { %1673 = vst [vmem:[%s202_s23 + $0x18] sm:$0xff] %v1669_v33  }
 0x142   : > { %1672 = vst [vmem:[%s202_s23 + $0x10] sm:$0xff] %v1664_v34  }
 0x143 PF: > { %s14_s15 = sadd.s32 1, %s1924_s15  }
 0x144   : > { %p11_p5 = scmp.ge.s32.totalorder %s14_s15, 4  }
 0x146   :  { %13 = sbr.rel (!%p11_p5) target bundleno = 1 (0x1), region = 77 }

// kernel: stem_block_forward.7
= control target key start
LH: loop header
LB: loop body
LE: loop exit
PB: predicated region body
PF: predicated region fallthrough
CT: control target
= control target key end

     0   :  { %s844_s21 = smov 0   ;;  %s963_s0 = inlined_call_operand.vmem [shape: bf16[8,4,4,128], index: 0, kind: input, shape index: {}]   ;;  %s964_s1 = inlined_call_operand.vmem [shape: bf16[2,4,4,128], index: 1, kind: input, shape index: {}]   ;;  %s965_s2 = inlined_call_operand.vmem [shape: bf16[128,128], index: 2, kind: input, shape index: {}]   ;;  %s966_s3 = inlined_call_operand.vmem [shape: bf16[128,128], index: 3, kind: input, shape index: {}]   ;;  %s967_s4 = inlined_call_operand.vmem [shape: f32[1,128], index: 4, kind: input, shape index: {}]   ;;  %s968_s5 = inlined_call_operand.vmem [shape: f32[1,128], index: 5, kind: input, shape index: {}]   ;;  %s969_s6 = inlined_call_operand.vmem [shape: f32[2,4,4,128], index: 6, kind: output, shape index: {}]  }
   0x1 LB: > { %s850_s22 = sadd.s32 4294967295, %s804_s21   ;;  %p668_p0 = scmp.ge.s32.totalorder %s804_s21, 1  ;;  %s804_s21 = sphi %s844_s21, %s16_s21  }
   0x2   : > { %p224_p1 = scmp.lt.s32.totalorder %s804_s21, 3 }
   0x4   : > { %p225_p2 = pnand %p668_p0, %p224_p1 }
   0x5   : > { %v782_v0 = vld [vmem:[%s966_s3] sm:$0xff] (!%p225_p2)   ;;  %v806_v1 = vmov (!%p225_p2), 0.0   ;;  %v784_v3 = vld [vmem:[%s966_s3 + $0x8] sm:$0xff] (!%p225_p2)   ;;  %vm807_vm0 = vmmov (!%p225_p2), 0   ;;  %p267_p3 = scmp.lt.s32.totalorder (!%p225_p2), %s850_s22, 1  ;;  %s669_s7 = sshll.u32 (!%p225_p2), %s850_s22, 2  ;;  %v354_v9 = vlaneseq (!%p225_p2) }
   0x6   : > { %228 = sbr.rel (%p225_p2) target bundleno = 264 (0x108), region = 44  ;;  %729 = vmatprep.subr.bf16.mxu1 (!%p225_p2), %v806_v1  ;;  %749 = vmatprep.subr.bf16.mxu0 (!%p225_p2), %v806_v1  ;;  %v783_v2 = vld [vmem:[%s965_s2] sm:$0xff] (!%p225_p2)   ;;  %v785_v4 = vld [vmem:[%s965_s2 + $0x8] sm:$0xff] (!%p225_p2)   ;;  %v786_v5 = vld [vmem:[%s966_s3 + $0x10] sm:$0xff] (!%p225_p2)   ;;  %p261_p4 = scmp.lt.s32.totalorder (!%p225_p2), %s669_s7, 7 }
   0x7   : > { %730 = vmatpush3.bf16.msra.mxu1 (!%p225_p2), %v782_v0  ;;  %745 = vmatprep.mubr.msk.bf16.mxu1 (!%p225_p2), %vm807_vm0, %v806_v1  ;;  %v787_v6 = vld [vmem:[%s965_s2 + $0x10] sm:$0xff] (!%p225_p2)   ;;  %v788_v7 = vld [vmem:[%s966_s3 + $0x18] sm:$0xff] (!%p225_p2)   ;;  %v790_v10 = vld [vmem:[%s966_s3 + $0x20] sm:$0xff] (!%p225_p2)   ;;  %v355_v12 = vshrl.u32 (!%p225_p2), %v354_v9, 7  ;;  %v808_v20 = vmov (!%p225_p2), 1983009808  }
   0x8   : > { %750 = vmatpush3.bf16.msra.mxu0 (!%p225_p2), %v783_v2  ;;  %731 = vmatprep.subr.bf16.mxu1 (!%p225_p2), %v806_v1  ;;  %v789_v8 = vld [vmem:[%s965_s2 + $0x18] sm:$0xff] (!%p225_p2)   ;;  %v791_v11 = vld [vmem:[%s965_s2 + $0x20] sm:$0xff] (!%p225_p2)   ;;  %v792_v13 = vld [vmem:[%s966_s3 + $0x28] sm:$0xff] (!%p225_p2)   ;;  %v352_v21 = vunpack.c.l.s4 (!%p225_p2), %v808_v20 }
   0x9   : > { %751 = vmatprep.subr.bf16.mxu0 (!%p225_p2), %v806_v1  ;;  %765 = vmatprep.mubr.msk.bf16.mxu0 (!%p225_p2), %vm807_vm0, %v806_v1  ;;  %v793_v17 = vld [vmem:[%s965_s2 + $0x28] sm:$0xff] (!%p225_p2)   ;;  %v794_v28 = vld [vmem:[%s966_s3 + $0x30] sm:$0xff] (!%p225_p2)   ;;  %v796_v57 = vld [vmem:[%s966_s3 + $0x38] sm:$0xff] (!%p225_p2)  }
   0xa   : > { %v353_v30 = vunpack.c.0.s8 (!%p225_p2), %v352_v21  ;;  %v795_v47 = vld [vmem:[%s965_s2 + $0x30] sm:$0xff] (!%p225_p2)   ;;  %v797_v58 = vld [vmem:[%s965_s2 + $0x38] sm:$0xff] (!%p225_p2)  }
   0xb   : > { %732 = vmatpush3.bf16.msra.mxu1 (!%p225_p2), %v784_v3 }
   0xc   : > { %752 = vmatpush3.bf16.msra.mxu0 (!%p225_p2), %v785_v4  ;;  %733 = vmatprep.subr.bf16.mxu1 (!%p225_p2), %v806_v1  ;;  %v356_v42 = vsub.s32 (!%p225_p2), %v353_v30, %v355_v12  ;;  %v704_v4 = vld [vmem:[%s967_s4] ss:$0 sm:$0xff] (!%p225_p2) }
   0xd   : > { %s971_s22 = smov (!%p267_p3, %s850_s22), 1  ;;  %753 = vmatprep.subr.bf16.mxu0 %v806_v1  ;;  %s973_s7 = smov (!%p261_p4, %s669_s7), 7 }
   0xe   : > { %s709_s14 = sshll.u32 %s971_s22, 3  ;;  %s708_s17 = sshll.u32 %s973_s7, 3 }
   0xf   : > { %734 = vmatpush3.bf16.msra.mxu1 %v786_v5  ;;  %s271_s20 = scalar_lea.vmem %s964_s1, %s709_s14  ;;  %s903_s27 = scalar_lea.vmem %s963_s0, %s708_s17 }
  0x10   : > { %754 = vmatpush3.bf16.msra.mxu0 %v787_v6  ;;  %735 = vmatprep.subr.bf16.mxu1 %v806_v1  ;;  %v325_v14 = vld [vmem:[%s271_s20] sm:$0x3]  ;;  %v326_v15 = vld [vmem:[%s271_s20 + $0x2] sm:$0x3]  ;;  %v327_v16 = vld [vmem:[%s271_s20 + $0x4] sm:$0x3] }
  0x11   : > { %755 = vmatprep.subr.bf16.mxu0 %v806_v1  ;;  %v328_v18 = vld [vmem:[%s271_s20 + $0x6] sm:$0x3]  ;;  %v278_v19 = vld [vmem:[%s903_s27] sm:$0x3]  ;;  %v279_v22 = vld [vmem:[%s903_s27 + $0x2] sm:$0x3]  ;;  %v349_v29 = vcombine.low %v325_v14, %v326_v15 }
  0x12   : > { %v280_v23 = vld [vmem:[%s903_s27 + $0x4] sm:$0x3]  ;;  %v281_v24 = vld [vmem:[%s903_s27 + $0x6] sm:$0x3]  ;;  %v676_v25 = vld [vmem:[%s903_s27 + $0x8] sm:$0x3]  ;;  %v350_v35 = vcombine.low %v327_v16, %v328_v18 }
  0x13   : > { %736 = vmatpush3.bf16.msra.mxu1 %v788_v7  ;;  %v677_v26 = vld [vmem:[%s903_s27 + $0xa] sm:$0x3]  ;;  %v678_v27 = vld [vmem:[%s903_s27 + $0xc] sm:$0x3]  ;;  %v679_v31 = vld [vmem:[%s903_s27 + $0xe] sm:$0x3]  ;;  %v287_v32 = vmax.bf16 %v676_v25, %v278_v19  ;;  %v357_v51 = vrot.slane %v349_v29, %v356_v42 }
  0x14   : > { %756 = vmatpush3.bf16.msra.mxu0 %v789_v8  ;;  %737 = vmatprep.subr.bf16.mxu1 %v806_v1  ;;  %v680_v33 = vld [vmem:[%s903_s27 + $0x10] sm:$0x3]  ;;  %v681_v34 = vld [vmem:[%s903_s27 + $0x12] sm:$0x3]  ;;  %v288_v36 = vmax.bf16 %v677_v26, %v279_v22  ;;  %v289_v37 = vmax.bf16 %v678_v27, %v280_v23  ;;  %v290_v38 = vmax.bf16 %v679_v31, %v281_v24  ;;  %v682_v39 = vld [vmem:[%s903_s27 + $0x14] sm:$0x3] }
  0x15   : > { %757 = vmatprep.subr.bf16.mxu0 %v806_v1  ;;  %v683_v40 = vld [vmem:[%s903_s27 + $0x16] sm:$0x3]  ;;  %v684_v41 = vld [vmem:[%s903_s27 + $0x18] sm:$0x3]  ;;  %v685_v43 = vld [vmem:[%s903_s27 + $0x1a] sm:$0x3]  ;;  %v364_v53 = vrot.slane %v350_v35, %v356_v42 }
  0x16   : > { %v686_v44 = vld [vmem:[%s903_s27 + $0x1c] sm:$0x3]  ;;  %v687_v45 = vld [vmem:[%s903_s27 + $0x1e] sm:$0x3]  ;;  %v301_v46 = vmax.bf16 %v684_v41, %v680_v33  ;;  %v302_v48 = vmax.bf16 %v685_v43, %v681_v34  ;;  %s710_s24 = sshll.u32 %s971_s22, 4 }
  0x17   : > { %738 = vmatpush3.bf16.msra.mxu1 %v790_v10  ;;  %v303_v49 = vmax.bf16 %v686_v44, %v682_v39  ;;  %v304_v50 = vmax.bf16 %v687_v45, %v683_v40  ;;  %v365_v61 = vcombine.low %v357_v51, %v364_v53  ;;  %s276_s27 = scalar_lea.vmem %s969_s6, %s710_s24 }
  0x18   : > { %758 = vmatpush3.bf16.msra.mxu0 %v791_v11  ;;  %739 = vmatprep.subr.bf16.mxu1 %v806_v1  ;;  %v305_v52 = vmax.bf16 %v301_v46, %v287_v32  ;;  %v306_v54 = vmax.bf16 %v302_v48, %v288_v36 }
  0x19   : > { %759 = vmatprep.subr.bf16.mxu0 %v806_v1  ;;  %v307_v55 = vmax.bf16 %v303_v49, %v289_v37  ;;  %v308_v56 = vmax.bf16 %v304_v50, %v290_v38 }
  0x1a   : > { %v460_v59 = vcombine.low %v305_v52, %v306_v54 }
  0x1b   : > { %740 = vmatpush3.bf16.msra.mxu1 %v792_v13  ;;  %v461_v60 = vcombine.low %v307_v55, %v308_v56 }
  0x1c   : > { %760 = vmatpush3.bf16.msra.mxu0 %v793_v17  ;;  %741 = vmatprep.subr.bf16.mxu1 %v806_v1  ;;  %v468_v62 = vrot.slane %v460_v59, %v356_v42 }
  0x1d   : > { %761 = vmatprep.subr.bf16.mxu0 %v806_v1  ;;  %v475_v63 = vrot.slane %v461_v60, %v356_v42 }
  0x1f   : > { %742 = vmatpush3.bf16.msra.mxu1 %v794_v28  ;;  %v476_v0 = vcombine.low %v468_v62, %v475_v63 }
  0x20   : > { %762 = vmatpush3.bf16.msra.mxu0 %v795_v47  ;;  %743 = vmatprep.subr.bf16.mxu1 %v806_v1 }
  0x21   : > { %763 = vmatprep.subr.bf16.mxu0 %v806_v1  ;;  %v705_v1 = vld [vmem:[%s968_s5] ss:$0 sm:$0xff] }
  0x23   : > { %744 = vmatpush3.bf16.msra.mxu1 %v796_v57 }
  0x24   : > { %764 = vmatpush3.bf16.msra.mxu0 %v797_v58 }
  0x26   : > { %746 = vmatmul.mubr.bf16.vlgmr.msra.gmra.mrb[0].mxu1 %v365_v61 }
  0x27   : > { %766 = vmatmul.mubr.bf16.vlgmr.msra.gmra.mrb[0].mxu0 %v476_v0 }
  0xf9   : > { %v449_v2 = vpop.f32.mrb[0].mxu1 }
  0xfa   : > { %v560_v3 = vpop.f32.mrb[0].mxu0  ;;  %v747_v5 = vpop.f32.mrb[1].mxu1 }
  0xfb   : > { %v561_v6 = vadd.f32 %v560_v3, %v449_v2  ;;  %v767_v7 = vpop.f32.mrb[1].mxu0  ;;  %v452_v8 = vpop.f32.mrb[2].mxu1 }
  0xfc   : > { %v563_v9 = vpop.f32.mrb[2].mxu0  ;;  %v748_v10 = vpop.f32.mrb[3].mxu1 }
  0xfd   : > { %v574_v11 = vmul.f32 %v704_v4, %v561_v6  ;;  %v564_v12 = vadd.f32 %v563_v9, %v452_v8  ;;  %v768_v13 = vpop.f32.mrb[3].mxu0 }
  0xff   : > { %v583_v14 = vadd.f32 %v705_v1, %v574_v11  ;;  %v575_v15 = vmul.f32 %v704_v4, %v564_v12 }
 0x101   : > { %v585_v16 = vmax.f32 %v583_v14, 0.0  ;;  %v584_v17 = vadd.f32 %v705_v1, %v575_v15 }
 0x103   : > { %v589_v18 = vcombine.high %v585_v16, %v585_v16  ;;  %593 = vst [vmem:[%s276_s27] sm:$0xf] %v585_v16  ;;  %v586_v19 = vmax.f32 %v584_v17, 0.0 }
 0x105   : > { %594 = vst [vmem:[%s276_s27 + $0x4] sm:$0xf] %v589_v18  ;;  %v590_v20 = vcombine.high %v586_v19, %v586_v19  ;;  %595 = vst [vmem:[%s276_s27 + $0x8] sm:$0xf] %v586_v19 }
 0x107   : > { %596 = vst [vmem:[%s276_s27 + $0xc] sm:$0xf] %v590_v20 }
 0x108 PF: > { %s16_s21 = sadd.s32 1, %s804_s21  }
 0x109   : > { %p13_p5 = scmp.ge.s32.totalorder %s16_s21, 4  }
 0x10b   :  { %15 = sbr.rel (!%p13_p5) target bundleno = 1 (0x1), region = 80 }

// kernel: stem_block_forward.6
= control target key start
LH: loop header
LB: loop body
LE: loop exit
PB: predicated region body
PF: predicated region fallthrough
CT: control target
= control target key end

     0   :  { %s2318_s15 = smov 0   ;;  %s2809_s0 = inlined_call_operand.vmem [shape: bf16[8,5,5,128], index: 0, kind: input, shape index: {}]   ;;  %s2810_s1 = inlined_call_operand.vmem [shape: bf16[9,128,128], index: 1, kind: input, shape index: {}]   ;;  %s2811_s2 = inlined_call_operand.vmem [shape: f32[1,128], index: 2, kind: input, shape index: {}]   ;;  %s2812_s3 = inlined_call_operand.vmem [shape: f32[1,128], index: 3, kind: input, shape index: {}]   ;;  %s2813_s4 = inlined_call_operand.vmem [shape: bf16[2,4,4,128], index: 4, kind: output, shape index: {}]  }
   0x1 LB: > { %s2324_s16 = sadd.s32 4294967295, %s2288_s15   ;;  %p1670_p0 = scmp.ge.s32.totalorder %s2288_s15, 1  ;;  %s2288_s15 = sphi %s2318_s15, %s14_s15  }
   0x2   : > { %p164_p1 = scmp.lt.s32.totalorder %s2288_s15, 3 }
   0x4   : > { %p165_p2 = pnand %p1670_p0, %p164_p1 }
   0x5   : > { %v2196_v0 = vld [vmem:[%s2810_s1 + $0x40] sm:$0xff] (!%p165_p2)   ;;  %v2290_v1 = vmov (!%p165_p2), 0.0   ;;  %v2198_v3 = vld [vmem:[%s2810_s1 + $0x48] sm:$0xff] (!%p165_p2)   ;;  %vm2291_vm0 = vmmov (!%p165_p2), 0   ;;  %s1671_s23 = sshll.u32 (!%p165_p2), %s2324_s16, 2  ;;  %v2200_v5 = vld [vmem:[%s2810_s1 + $0x50] sm:$0xff] (!%p165_p2)   ;;  %v267_v9 = vlaneseq (!%p165_p2) }
   0x6   : > { %168 = sbr.rel (%p165_p2) target bundleno = 394 (0x18a), region = 36  ;;  %1974 = vmatprep.subr.bf16.mxu1 (!%p165_p2), %v2290_v1  ;;  %2054 = vmatprep.subr.bf16.mxu0 (!%p165_p2), %v2290_v1  ;;  %v2197_v2 = vld [vmem:[%s2810_s1 + $0x100] sm:$0xff] (!%p165_p2)   ;;  %v2199_v4 = vld [vmem:[%s2810_s1 + $0x108] sm:$0xff] (!%p165_p2)   ;;  %p192_p3 = scmp.lt.s32.totalorder (!%p165_p2), %s1671_s23, 7  ;;  %v2201_v6 = vld [vmem:[%s2810_s1 + $0x110] sm:$0xff] (!%p165_p2)  }
   0x7   : > { %1975 = vmatpush3.bf16.msra.mxu1 (!%p165_p2), %v2196_v0  ;;  %1990 = vmatprep.mubr.msk.bf16.mxu1 (!%p165_p2), %vm2291_vm0, %v2290_v1  ;;  %v2202_v7 = vld [vmem:[%s2810_s1 + $0x58] sm:$0xff] (!%p165_p2)   ;;  %v2204_v10 = vld [vmem:[%s2810_s1 + $0x60] sm:$0xff] (!%p165_p2)   ;;  %v2206_v12 = vld [vmem:[%s2810_s1 + $0x68] sm:$0xff] (!%p165_p2)   ;;  %v268_v15 = vshrl.u32 (!%p165_p2), %v267_v9, 7  ;;  %v2292_v21 = vmov (!%p165_p2), 1983009808  }
   0x8   : > { %2055 = vmatpush3.bf16.msra.mxu0 (!%p165_p2), %v2197_v2  ;;  %1976 = vmatprep.subr.bf16.mxu1 (!%p165_p2), %v2290_v1  ;;  %v2203_v8 = vld [vmem:[%s2810_s1 + $0x118] sm:$0xff] (!%p165_p2)   ;;  %v2205_v11 = vld [vmem:[%s2810_s1 + $0x120] sm:$0xff] (!%p165_p2)   ;;  %v2207_v16 = vld [vmem:[%s2810_s1 + $0x128] sm:$0xff] (!%p165_p2)   ;;  %v265_v22 = vunpack.c.l.s4 (!%p165_p2), %v2292_v21  ;;  %vm512_vm1 = vsmask.f32 (!%p165_p2), 1280  ;;  %p198_p4 = scmp.lt.s32.totalorder (!%p165_p2), %s2324_s16, 1 }
   0x9   : > { %2056 = vmatprep.subr.bf16.mxu0 (!%p165_p2), %v2290_v1  ;;  %2070 = vmatprep.mubr.msk.bf16.mxu0 (!%p165_p2), %vm2291_vm0, %v2290_v1  ;;  %v2208_v24 = vld [vmem:[%s2810_s1 + $0x70] sm:$0xff] (!%p165_p2)   ;;  %v2210_v36 = vld [vmem:[%s2810_s1 + $0x78] sm:$0xff] (!%p165_p2)   ;;  %v2216_v40 = vld [vmem:[%s2810_s1] sm:$0xff] (!%p165_p2)   ;;  %vm513_vm2 = vsmask.f32 (!%p165_p2), 3336 }
   0xa   : > { %v266_v25 = vunpack.c.0.s8 (!%p165_p2), %v265_v22  ;;  %v2209_v31 = vld [vmem:[%s2810_s1 + $0x130] sm:$0xff] (!%p165_p2)   ;;  %v2211_v37 = vld [vmem:[%s2810_s1 + $0x138] sm:$0xff] (!%p165_p2)   ;;  %v2219_v42 = vld [vmem:[%s2810_s1 + $0x140] sm:$0xff] (!%p165_p2)   ;;  %vm515_vm3 = vsmask.f32 (!%p165_p2), 5392 }
   0xb   : > { %1977 = vmatpush3.bf16.msra.mxu1 (!%p165_p2), %v2198_v3  ;;  %v2220_v43 = vld [vmem:[%s2810_s1 + $0x8] sm:$0xff] (!%p165_p2)   ;;  %v2222_v45 = vld [vmem:[%s2810_s1 + $0x10] sm:$0xff] (!%p165_p2)   ;;  %v2224_v53 = vld [vmem:[%s2810_s1 + $0x18] sm:$0xff] (!%p165_p2)   ;;  %vm517_vm5 = vsmask.f32 (!%p165_p2), 7448 }
   0xc   : > { %2057 = vmatpush3.bf16.msra.mxu0 (!%p165_p2), %v2199_v4  ;;  %1978 = vmatprep.subr.bf16.mxu1 (!%p165_p2), %v2290_v1  ;;  %v2395_v29 = vsub.s32 (!%p165_p2), %v266_v25, %v268_v15  ;;  %v2221_v44 = vld [vmem:[%s2810_s1 + $0x148] sm:$0xff] (!%p165_p2)   ;;  %v2223_v46 = vld [vmem:[%s2810_s1 + $0x150] sm:$0xff] (!%p165_p2)   ;;  %vm2466_vm4 = vmor (!%p165_p2), %vm512_vm1, %vm513_vm2 }
   0xd   : > { %s2821_s23 = smov (!%p192_p3, %s1671_s23), 7  ;;  %2058 = vmatprep.subr.bf16.mxu0 %v2290_v1  ;;  %v2225_v58 = vld [vmem:[%s2810_s1 + $0x158] sm:$0xff]   ;;  %v2226_v62 = vld [vmem:[%s2810_s1 + $0x20] sm:$0xff]   ;;  %vm2491_vm6 = vmor %vm2466_vm4, %vm515_vm3  ;;  %s2823_s16 = smov (!%p198_p4, %s2324_s16), 1 }
   0xe   : > { %s2184_s30 = smul.u32 20, %s2821_s23  ;;  %vm2509_vm7 = vmor %vm2491_vm6, %vm517_vm5  ;;  %v2249_v22 = vld [vmem:[%s2810_s1 + $0x1b0] sm:$0xff]   ;;  %s1892_s27 = sshll.u32 %s2823_s16, 3 }
   0xf   : > { %1979 = vmatpush3.bf16.msra.mxu1 %v2200_v5 }
  0x10   : > { %2059 = vmatpush3.bf16.msra.mxu0 %v2201_v6  ;;  %1980 = vmatprep.subr.bf16.mxu1 %v2290_v1  ;;  %s2368_s11 = scalar_lea.vmem %s2809_s0, %s2184_s30  ;;  %s202_s30 = scalar_lea.vmem %s2813_s4, %s1892_s27 }
  0x11   : > { %2060 = vmatprep.subr.bf16.mxu0 %v2290_v1  ;;  %v1676_v13 = vld [vmem:[%s2368_s11 + $0x18] sm:$0x7]  ;;  %v1677_v14 = vld [vmem:[%s2368_s11 + $0x1c] sm:$0x7]  ;;  %v1678_v17 = vld [vmem:[%s2368_s11 + $0x20] sm:$0x7] }
  0x12   : > { %v1679_v18 = vld [vmem:[%s2368_s11 + $0x24] sm:$0x7]  ;;  %v1320_v19 = vcombine.low %v1676_v13, %v1677_v14  ;;  %v1675_v20 = vld [vmem:[%s2368_s11 + $0x14] sm:$0x7]  ;;  %v263_v27 = vcombine.low %v1677_v14, %v1678_v17  ;;  %v2448_v47 = vld [vmem:[%s2368_s11 + $0x28] sm:$0x7] }
  0x13   : > { %1981 = vmatpush3.bf16.msra.mxu1 %v2202_v7  ;;  %v1321_v23 = vcombine.low %v1678_v17, %v1679_v18  ;;  %v262_v26 = vcombine.low %v1675_v20, %v1676_v13  ;;  %v2280_v28 = vld.sshfl [vmem:[%s2368_s11 + $0x3c] sm:$0x5f pattern:$0x76325410]  ;;  %v2452_v48 = vld [vmem:[%s2368_s11 + $0x2c] sm:$0x7]  ;;  %v967_v51 = vrot.slane %v2448_v47, %v2395_v29 }
  0x14   : > { %2061 = vmatpush3.bf16.msra.mxu0 %v2203_v8  ;;  %1982 = vmatprep.subr.bf16.mxu1 %v2290_v1  ;;  %v2281_v30 = vld.sshfl [vmem:[%s2368_s11 + $0x44] sm:$0x5f pattern:$0x76325410]  ;;  %v277_v33 = vrot.slane %v263_v27, %v2395_v29  ;;  %v2406_v34 = vrot.slane %v1320_v19, %v2395_v29  ;;  %v2455_v49 = vld [vmem:[%s2368_s11 + $0x30] sm:$0x7]  ;;  %v975_v55 = vrot.slane %v2452_v48, %v2395_v29 }
  0x15   : > { %2062 = vmatprep.subr.bf16.mxu0 %v2290_v1  ;;  %v270_v32 = vrot.slane %v262_v26, %v2395_v29  ;;  %v2409_v35 = vrot.slane %v1321_v23, %v2395_v29  ;;  %v868_v41 = vcombine.low %v2280_v28, %v2281_v30  ;;  %v2458_v50 = vld [vmem:[%s2368_s11 + $0x34] sm:$0x7]  ;;  %v968_v52 = vcombine.high %v967_v51, %v967_v51  ;;  %v204_v4 = vld [vmem:[%s2368_s11] sm:$0x7]  ;;  %v2486_v5 = vld [vmem:[%s2368_s11 + $0x4] sm:$0x7] }
  0x16   : > { %v983_v56 = vrot.slane %v2455_v49, %v2395_v29  ;;  %v991_v57 = vrot.slane %v2458_v50, %v2395_v29  ;;  %v994_v59 = vshrl.u32 %v967_v51, 16  ;;  %v997_v60 = vshll.u32 %v967_v51, 16  ;;  %v2227_v17 = vld [vmem:[%s2810_s1 + $0x160] sm:$0xff]   ;;  %v2228_v27 = vld [vmem:[%s2810_s1 + $0x28] sm:$0xff]  }
  0x17   : > { %1983 = vmatpush3.bf16.msra.mxu1 %v2204_v10  ;;  %v1336_v38 = vcombine.low %v2406_v34, %v2409_v35  ;;  %v278_v39 = vcombine.low %v270_v32, %v277_v33  ;;  %v1003_v61 = vshll.u32 %v968_v52, 16  ;;  %v976_v63 = vcombine.high %v975_v55, %v975_v55  ;;  %v2275_v34 = vld [vmem:[%s2810_s1 + $0x218] sm:$0xff]   ;;  %v2276_v35 = vld [vmem:[%s2810_s1 + $0x220] sm:$0xff]  }
  0x18   : > { %2063 = vmatpush3.bf16.msra.mxu0 %v2205_v11  ;;  %1984 = vmatprep.subr.bf16.mxu1 %v2290_v1  ;;  %v984_v0 = vcombine.high %v983_v56, %v983_v56  ;;  %v992_v2 = vcombine.high %v991_v57, %v991_v57  ;;  %v1008_v3 = vshrl.u32 %v975_v55, 16  ;;  %v996_v7 = vrot.slane %v994_v59, 6  ;;  %v2496_v11 = vld [vmem:[%s2368_s11 + $0x8] sm:$0x7] }
  0x19   : > { %2064 = vmatprep.subr.bf16.mxu0 %v2290_v1  ;;  %v999_v8 = vrot.slane %v997_v60, 7  ;;  %v1005_v9 = vrot.slane %v1003_v61, 7  ;;  %v1011_v10 = vshll.u32 %v975_v55, 16  ;;  %v1017_v14 = vshll.u32 %v976_v63, 16 }
  0x1a   : > { %v1010_v13 = vrot.slane %v1008_v3, 6  ;;  %v1022_v15 = vshrl.u32 %v983_v56, 16  ;;  %v1031_v20 = vshll.u32 %v984_v0, 16  ;;  %v1036_v21 = vshrl.u32 %v991_v57, 16 }
  0x1b   : > { %1985 = vmatpush3.bf16.msra.mxu1 %v2206_v12  ;;  %v2499_v12 = vld [vmem:[%s2368_s11 + $0xc] sm:$0x7]  ;;  %v1000_v18 = vor.u32 %v999_v8, %v996_v7  ;;  %v1013_v19 = vrot.slane %v1011_v10, 7  ;;  %v1019_v23 = vrot.slane %v1017_v14, 7  ;;  %v1039_v26 = vshll.u32 %v991_v57, 16  ;;  %v2230_v57 = vld [vmem:[%s2810_s1 + $0x30] sm:$0xff]  }
  0x1c   : > { %2065 = vmatpush3.bf16.msra.mxu0 %v2207_v16  ;;  %1986 = vmatprep.subr.bf16.mxu1 %v2290_v1  ;;  %v1025_v16 = vshll.u32 %v983_v56, 16  ;;  %v1038_v32 = vrot.slane %v1036_v21, 6  ;;  %v373_v33 = vcombine.low %v204_v4, %v2486_v5  ;;  %v722_v55 = vcombine.low %v2448_v47, %v2452_v48  ;;  %v2231_v47 = vld [vmem:[%s2810_s1 + $0x170] sm:$0xff]   ;;  %v2233_v8 = vld [vmem:[%s2810_s1 + $0x178] sm:$0xff]  }
  0x1d   : > { %2066 = vmatprep.subr.bf16.mxu0 %v2290_v1  ;;  %v1001_v28 = vrot.slane %v1000_v18, 2  ;;  %v1014_v30 = vor.u32 %v1013_v19, %v1010_v13  ;;  %v723_v56 = vcombine.low %v2455_v49, %v2458_v50  ;;  %v1193_v10 = vcombine.low %v2486_v5, %v2496_v11 }
  0x1e   : > { %v1027_v25 = vrot.slane %v1025_v16, 7  ;;  %v2551_v49 = vrot.slane %v722_v55, %v2395_v29 }
  0x1f   : > { %1987 = vmatpush3.bf16.msra.mxu1 %v2208_v24  ;;  %v1024_v24 = vrot.slane %v1022_v15, 6  ;;  %v2554_v50 = vrot.slane %v723_v56, %v2395_v29 }
  0x20   : > { %2067 = vmatpush3.bf16.msra.mxu0 %v2209_v31  ;;  %1988 = vmatprep.subr.bf16.mxu1 %v2290_v1  ;;  %v1033_v31 = vrot.slane %v1031_v20, 7 }
  0x21   : > { %2068 = vmatprep.subr.bf16.mxu0 %v2290_v1  ;;  %v738_v7 = vcombine.low %v2551_v49, %v2554_v50  ;;  %v2274_v49 = vld [vmem:[%s2810_s1 + $0x210] sm:$0xff]  }
  0x22   : > { %v2278_v50 = vld [vmem:[%s2810_s1 + $0x230] sm:$0xff]  }
  0x23   : > { %1989 = vmatpush3.bf16.msra.mxu1 %v2210_v36  ;;  %v1028_v36 = vor.u32 %v1027_v25, %v1024_v24  ;;  %v2236_v24 = vld [vmem:[%s2810_s1 + $0x80] sm:$0xff]  }
  0x24   : > { %2069 = vmatpush3.bf16.msra.mxu0 %v2211_v37  ;;  %1994 = vmatprep.subr.bf16.mxu1 %v2290_v1  ;;  %v1041_v37 = vrot.slane %v1039_v26, 7 }
  0x25   : > { %2074 = vmatprep.subr.bf16.mxu0 %v2290_v1 }
  0x26   : > { %1991 = vmatmul.mubr.bf16.vlgmr.msra.gmra.mrb[0].mxu1 %v278_v39  ;;  %v1045_v39 = vshll.u32 %v992_v2, 16  ;;  %v1042_v51 = vor.u32 %v1041_v37, %v1038_v32  ;;  %v2232_v2 = vld [vmem:[%s2810_s1 + $0x38] sm:$0xff]   ;;  %v2237_v32 = vld [vmem:[%s2810_s1 + $0x180] sm:$0xff]   ;;  %v2588_v37 = vrot.slane %v1193_v10, %v2395_v29 }
  0x27   : > { %1995 = vmatpush3.bf16.msra.mxu1 %v2216_v40  ;;  %2071 = vmatmul.mubr.bf16.vlgmr.msra.gmra.mrb[0].mxu0 %v868_v41  ;;  %v2229_v40 = vld [vmem:[%s2810_s1 + $0x168] sm:$0xff]   ;;  %v374_v41 = vcombine.low %v2496_v11, %v2499_v12 }
  0x28   : > { %2075 = vmatpush3.bf16.msra.mxu0 %v2219_v42  ;;  %1996 = vmatprep.subr.bf16.mxu1 %v2290_v1  ;;  %v2524_v42 = vrot.slane %v204_v4, %v2395_v29  ;;  %v1047_v52 = vrot.slane %v1045_v39, 7  ;;  %v1043_v60 = vrot.slane %v1042_v51, 2  ;;  %v2238_v39 = vld [vmem:[%s2810_s1 + $0x88] sm:$0xff]  }
  0x29   : > { %2076 = vmatprep.subr.bf16.mxu0 %v2290_v1  ;;  %2010 = vmatprep.mubr.msk.bf16.mxu1 %vm2291_vm0, %v2290_v1  ;;  %v388_v48 = vrot.slane %v374_v41, %v2395_v29 }
  0x2a   : > { %2090 = vmatprep.mubr.msk.bf16.mxu0 %vm2291_vm0, %v2290_v1  ;;  %v1048_v63 = vsel %vm2509_vm7, %v1043_v60, %v1047_v52  ;;  %v520_v14 = vshrl.u32 %v2524_v42, 16  ;;  %v523_v15 = vshll.u32 %v2524_v42, 16  ;;  %v2239_v52 = vld [vmem:[%s2810_s1 + $0x188] sm:$0xff]  }
  0x2b   : > { %1997 = vmatpush3.bf16.msra.mxu1 %v2220_v43  ;;  %v1006_v43 = vsel %vm2509_vm7, %v1001_v28, %v1005_v9 }
  0x2c   : > { %2077 = vmatpush3.bf16.msra.mxu0 %v2221_v44  ;;  %1998 = vmatprep.subr.bf16.mxu1 %v2290_v1  ;;  %v1015_v44 = vrot.slane %v1014_v30, 2  ;;  %v208_v30 = vld [vmem:[%s2368_s11 + $0x10] sm:$0x7]  ;;  %v525_v60 = vrot.slane %v523_v15, 7 }
  0x2d   : > { %2078 = vmatprep.subr.bf16.mxu0 %v2290_v1 }
  0x2e   : > { %v1020_v54 = vsel %vm2509_vm7, %v1015_v44, %v1019_v23  ;;  %v1435_v44 = vrot.slane %v208_v30, %v2395_v29 }
  0x2f   : > { %1999 = vmatpush3.bf16.msra.mxu1 %v2222_v45  ;;  %v494_v45 = vrot.slane %v2486_v5, %v2395_v29  ;;  %v1066_v61 = vcombine.low %v1006_v43, %v1020_v54  ;;  %v1194_v43 = vcombine.low %v2499_v12, %v208_v30  ;;  %v2247_v30 = vld [vmem:[%s2810_s1 + $0x1a8] sm:$0xff]  }
  0x30   : > { %2079 = vmatpush3.bf16.msra.mxu0 %v2223_v46  ;;  %2000 = vmatprep.subr.bf16.mxu1 %v2290_v1  ;;  %v1029_v46 = vrot.slane %v1028_v36, 2  ;;  %v1438_v56 = vshrl.u32 %v1435_v44, 16 }
  0x31   : > { %2080 = vmatprep.subr.bf16.mxu0 %v2290_v1  ;;  %v495_v0 = vcombine.high %v494_v45, %v494_v45  ;;  %v534_v6 = vshrl.u32 %v494_v45, 16  ;;  %v1074_v9 = vrot.slane %v1066_v61, %v2395_v29  ;;  %v537_v19 = vshll.u32 %v494_v45, 16 }
  0x32   : > { %v1034_v59 = vsel %vm2509_vm7, %v1029_v46, %v1033_v31  ;;  %v2582_v31 = vrot.slane %v520_v14, 6  ;;  %v2600_v55 = vrot.slane %v1194_v43, %v2395_v29 }
  0x33   : > { %2001 = vmatpush3.bf16.msra.mxu1 %v2224_v53  ;;  %v502_v53 = vrot.slane %v2496_v11, %v2395_v29  ;;  %v1067_v3 = vcombine.low %v1034_v59, %v1048_v63  ;;  %v536_v18 = vrot.slane %v534_v6, 6  ;;  %v543_v21 = vshll.u32 %v495_v0, 16 }
  0x34   : > { %2081 = vmatpush3.bf16.msra.mxu0 %v2225_v58  ;;  %2002 = vmatprep.subr.bf16.mxu1 %v2290_v1  ;;  %v381_v58 = vrot.slane %v373_v33, %v2395_v29  ;;  %v539_v26 = vrot.slane %v537_v19, 7  ;;  %v1436_v59 = vcombine.high %v1435_v44, %v1435_v44  ;;  %v1209_v61 = vcombine.low %v2588_v37, %v2600_v55  ;;  %v2258_v37 = vld [vmem:[%s2810_s1 + $0xd0] sm:$0xff]   ;;  %v2263_v55 = vld [vmem:[%s2810_s1 + $0x1e0] sm:$0xff]  }
  0x35   : > { %2082 = vmatprep.subr.bf16.mxu0 %v2290_v1  ;;  %v503_v4 = vcombine.high %v502_v53, %v502_v53  ;;  %v1081_v16 = vrot.slane %v1067_v3, %v2395_v29  ;;  %v548_v20 = vshrl.u32 %v502_v53, 16  ;;  %v551_v23 = vshll.u32 %v502_v53, 16 }
  0x36   : > { %v389_v13 = vcombine.low %v381_v58, %v388_v48  ;;  %v545_v45 = vrot.slane %v543_v21, 7  ;;  %v1441_v58 = vshll.u32 %v1435_v44, 16  ;;  %v2240_v48 = vld [vmem:[%s2810_s1 + $0x90] sm:$0xff]   ;;  %v487_v3 = vcombine.high %v2524_v42, %v2524_v42  ;;  %v2242_v42 = vld [vmem:[%s2810_s1 + $0x98] sm:$0xff]   ;;  %v2255_v44 = vld [vmem:[%s2810_s1 + $0x1c0] sm:$0xff]  }
  0x37   : > { %2003 = vmatpush3.bf16.msra.mxu1 %v2226_v62  ;;  %v510_v62 = vrot.slane %v2499_v12, %v2395_v29  ;;  %v557_v5 = vshll.u32 %v503_v4, 16  ;;  %v1082_v25 = vcombine.low %v1074_v9, %v1081_v16  ;;  %v553_v33 = vrot.slane %v551_v23, 7  ;;  %v2244_v23 = vld [vmem:[%s2810_s1 + $0xa0] sm:$0xff]  }
  0x38   : > { %2083 = vmatpush3.bf16.msra.mxu0 %v2227_v17  ;;  %2004 = vmatprep.subr.bf16.mxu1 %v2290_v1  ;;  %v1443_v0 = vrot.slane %v1441_v58, 7  ;;  %v1447_v4 = vshll.u32 %v1436_v59, 16  ;;  %v526_v16 = vor.u32 %v525_v60, %v2582_v31  ;;  %v2267_v58 = vld [vmem:[%s2810_s1 + $0x1f0] sm:$0xff]   ;;  %v2268_v59 = vld [vmem:[%s2810_s1 + $0xf8] sm:$0xff]  }
  0x39   : > { %2084 = vmatprep.subr.bf16.mxu0 %v2290_v1  ;;  %v511_v17 = vcombine.high %v510_v62, %v510_v62  ;;  %v562_v11 = vshrl.u32 %v510_v62, 16  ;;  %v565_v28 = vshll.u32 %v510_v62, 16  ;;  %v559_v51 = vrot.slane %v557_v5, 7  ;;  %v2269_v60 = vld [vmem:[%s2810_s1 + $0x1f8] sm:$0xff]  }
  0x3a   : > { %v527_v5 = vrot.slane %v526_v16, 2 }
  0x3b   : > { %2005 = vmatpush3.bf16.msra.mxu1 %v2228_v27  ;;  %v550_v27 = vrot.slane %v548_v20, 6  ;;  %v564_v36 = vrot.slane %v562_v11, 6  ;;  %v567_v41 = vrot.slane %v565_v28, 7  ;;  %v571_v54 = vshll.u32 %v511_v17, 16 }
  0x3c   : > { %2085 = vmatpush3.bf16.msra.mxu0 %v2229_v40  ;;  %2006 = vmatprep.subr.bf16.mxu1 %v2290_v1  ;;  %v540_v40 = vor.u32 %v539_v26, %v536_v18  ;;  %v529_v17 = vshll.u32 %v487_v3, 16  ;;  %v2243_v18 = vld [vmem:[%s2810_s1 + $0x198] sm:$0xff]   ;;  %v1888_v3 = vld [vmem:[%s2811_s2] ss:$0 sm:$0xff] }
  0x3d   : > { %2086 = vmatprep.subr.bf16.mxu0 %v2290_v1  ;;  %v554_v46 = vor.u32 %v553_v33, %v550_v27  ;;  %v573_v9 = vrot.slane %v571_v54, 7  ;;  %v2246_v27 = vld [vmem:[%s2810_s1 + $0xa8] sm:$0xff]   ;;  %v2248_v33 = vld [vmem:[%s2810_s1 + $0xb0] sm:$0xff]   ;;  %v2262_v54 = vld [vmem:[%s2810_s1 + $0xe0] sm:$0xff]  }
  0x3e   : > { %v541_v53 = vrot.slane %v540_v40, 2  ;;  %v531_v11 = vrot.slane %v529_v17, 7  ;;  %v2250_v40 = vld [vmem:[%s2810_s1 + $0xb8] sm:$0xff]  }
  0x3f   : > { %2007 = vmatpush3.bf16.msra.mxu1 %v2230_v57  ;;  %v555_v12 = vrot.slane %v554_v46, 2  ;;  %v568_v57 = vor.u32 %v567_v41, %v564_v36  ;;  %v2251_v41 = vld [vmem:[%s2810_s1 + $0x1b8] sm:$0xff]   ;;  %v2257_v46 = vld [vmem:[%s2810_s1 + $0x1c8] sm:$0xff]  }
  0x40   : > { %2087 = vmatpush3.bf16.msra.mxu0 %v2231_v47  ;;  %2008 = vmatprep.subr.bf16.mxu1 %v2290_v1  ;;  %v1440_v47 = vrot.slane %v1438_v56, 6  ;;  %v546_v62 = vsel %vm2509_vm7, %v541_v53, %v545_v45  ;;  %v532_v28 = vsel %vm2509_vm7, %v527_v5, %v531_v11  ;;  %v2256_v45 = vld [vmem:[%s2810_s1 + $0xc8] sm:$0xff]   ;;  %v2261_v53 = vld [vmem:[%s2810_s1 + $0x1d8] sm:$0xff]  }
  0x41   : > { %2088 = vmatprep.subr.bf16.mxu0 %v2290_v1  ;;  %v560_v63 = vsel %vm2509_vm7, %v555_v12, %v559_v51  ;;  %v592_v31 = vcombine.low %v532_v28, %v546_v62  ;;  %v2259_v51 = vld [vmem:[%s2810_s1 + $0x1d0] sm:$0xff]   ;;  %v2264_v56 = vld [vmem:[%s2810_s1 + $0xe8] sm:$0xff]  }
  0x42   : > { %v1468_v6 = vcombine.low %v546_v62, %v560_v63  ;;  %v1444_v10 = vor.u32 %v1443_v0, %v1440_v47  ;;  %v2265_v12 = vld [vmem:[%s2810_s1 + $0x1e8] sm:$0xff]  }
  0x43   : > { %2009 = vmatpush3.bf16.msra.mxu1 %v2232_v2  ;;  %v2241_v2 = vld [vmem:[%s2810_s1 + $0x190] sm:$0xff]   ;;  %v600_v36 = vrot.slane %v592_v31, %v2395_v29  ;;  %v2273_v47 = vld [vmem:[%s2810_s1 + $0x208] sm:$0xff]  }
  0x44   : > { %2089 = vmatpush3.bf16.msra.mxu0 %v2233_v8  ;;  %2014 = vmatprep.subr.bf16.mxu1 %v2290_v1  ;;  %v569_v8 = vrot.slane %v568_v57, 2  ;;  %v2625_v14 = vrot.slane %v1468_v6, %v2395_v29  ;;  %v1445_v15 = vrot.slane %v1444_v10, 2  ;;  %v2266_v57 = vld [vmem:[%s2810_s1 + $0xf0] sm:$0xff]  }
  0x45   : > { %2094 = vmatprep.subr.bf16.mxu0 %v2290_v1 }
  0x46   : > { %2011 = vmatmul.mubr.bf16.vlgmr.msra.gmra.mrb[0].mxu1 %v389_v13  ;;  %v1449_v13 = vrot.slane %v1447_v4, 7  ;;  %v574_v19 = vsel %vm2509_vm7, %v569_v8, %v573_v9 }
  0x47   : > { %2015 = vmatpush3.bf16.msra.mxu1 %v2236_v24  ;;  %2091 = vmatmul.mubr.bf16.vlgmr.msra.gmra.mrb[0].mxu0 %v1082_v25  ;;  %v2245_v25 = vld [vmem:[%s2810_s1 + $0x1a0] sm:$0xff]  }
  0x48   : > { %2095 = vmatpush3.bf16.msra.mxu0 %v2237_v32  ;;  %2016 = vmatprep.subr.bf16.mxu1 %v2290_v1  ;;  %v1450_v20 = vsel %vm2509_vm7, %v1445_v15, %v1449_v13  ;;  %v593_v32 = vcombine.low %v560_v63, %v574_v19 }
  0x49   : > { %2096 = vmatprep.subr.bf16.mxu0 %v2290_v1  ;;  %2030 = vmatprep.mubr.msk.bf16.mxu1 %vm2291_vm0, %v2290_v1  ;;  %v1469_v21 = vcombine.low %v574_v19, %v1450_v20 }
  0x4a   : > { %2110 = vmatprep.mubr.msk.bf16.mxu0 %vm2291_vm0, %v2290_v1 }
  0x4b   : > { %2017 = vmatpush3.bf16.msra.mxu1 %v2238_v39  ;;  %v2644_v24 = vrot.slane %v1469_v21, %v2395_v29  ;;  %v607_v39 = vrot.slane %v593_v32, %v2395_v29  ;;  %v2252_v29 = vld [vmem:[%s2810_s1 + $0xc0] sm:$0xff]  }
  0x4c   : > { %2097 = vmatpush3.bf16.msra.mxu0 %v2239_v52  ;;  %2018 = vmatprep.subr.bf16.mxu1 %v2290_v1  ;;  %v2260_v52 = vld [vmem:[%s2810_s1 + $0xd8] sm:$0xff]  }
  0x4d   : > { %2098 = vmatprep.subr.bf16.mxu0 %v2290_v1  ;;  %v1484_v26 = vcombine.low %v2625_v14, %v2644_v24  ;;  %v608_v43 = vcombine.low %v600_v36, %v607_v39 }
  0x4f   : > { %2019 = vmatpush3.bf16.msra.mxu1 %v2240_v48 }
  0x50   : > { %2099 = vmatpush3.bf16.msra.mxu0 %v2241_v2  ;;  %2020 = vmatprep.subr.bf16.mxu1 %v2290_v1 }
  0x51   : > { %2100 = vmatprep.subr.bf16.mxu0 %v2290_v1 }
  0x53   : > { %2021 = vmatpush3.bf16.msra.mxu1 %v2242_v42 }
  0x54   : > { %2101 = vmatpush3.bf16.msra.mxu0 %v2243_v18  ;;  %2022 = vmatprep.subr.bf16.mxu1 %v2290_v1 }
  0x55   : > { %2102 = vmatprep.subr.bf16.mxu0 %v2290_v1 }
  0x57   : > { %2023 = vmatpush3.bf16.msra.mxu1 %v2244_v23 }
  0x58   : > { %2103 = vmatpush3.bf16.msra.mxu0 %v2245_v25  ;;  %2024 = vmatprep.subr.bf16.mxu1 %v2290_v1 }
  0x59   : > { %2104 = vmatprep.subr.bf16.mxu0 %v2290_v1 }
  0x5b   : > { %2025 = vmatpush3.bf16.msra.mxu1 %v2246_v27 }
  0x5c   : > { %2105 = vmatpush3.bf16.msra.mxu0 %v2247_v30  ;;  %2026 = vmatprep.subr.bf16.mxu1 %v2290_v1 }
  0x5d   : > { %2106 = vmatprep.subr.bf16.mxu0 %v2290_v1 }
  0x5f   : > { %2027 = vmatpush3.bf16.msra.mxu1 %v2248_v33 }
  0x60   : > { %2107 = vmatpush3.bf16.msra.mxu0 %v2249_v22  ;;  %2028 = vmatprep.subr.bf16.mxu1 %v2290_v1 }
  0x61   : > { %2108 = vmatprep.subr.bf16.mxu0 %v2290_v1 }
  0x63   : > { %2029 = vmatpush3.bf16.msra.mxu1 %v2250_v40 }
  0x64   : > { %2109 = vmatpush3.bf16.msra.mxu0 %v2251_v41  ;;  %2034 = vmatprep.subr.bf16.mxu1 %v2290_v1 }
  0x65   : > { %2114 = vmatprep.subr.bf16.mxu0 %v2290_v1 }
  0x66   : > { %2031 = vmatmul.mubr.bf16.vlgmr.msra.gmra.mrb[0].mxu1 %v608_v43 }
  0x67   : > { %2035 = vmatpush3.bf16.msra.mxu1 %v2252_v29  ;;  %2111 = vmatmul.mubr.bf16.vlgmr.msra.gmra.mrb[0].mxu0 %v1209_v61  ;;  %v2272_v61 = vld [vmem:[%s2810_s1 + $0x200] sm:$0xff]  }
  0x68   : > { %2115 = vmatpush3.bf16.msra.mxu0 %v2255_v44  ;;  %2036 = vmatprep.subr.bf16.mxu1 %v2290_v1 }
  0x69   : > { %2116 = vmatprep.subr.bf16.mxu0 %v2290_v1  ;;  %2050 = vmatprep.mubr.msk.bf16.mxu1 %vm2291_vm0, %v2290_v1 }
  0x6a   : > { %2130 = vmatprep.mubr.msk.bf16.mxu0 %vm2291_vm0, %v2290_v1 }
  0x6b   : > { %2037 = vmatpush3.bf16.msra.mxu1 %v2256_v45 }
  0x6c   : > { %2117 = vmatpush3.bf16.msra.mxu0 %v2257_v46  ;;  %2038 = vmatprep.subr.bf16.mxu1 %v2290_v1 }
  0x6d   : > { %2118 = vmatprep.subr.bf16.mxu0 %v2290_v1 }
  0x6f   : > { %2039 = vmatpush3.bf16.msra.mxu1 %v2258_v37 }
  0x70   : > { %2119 = vmatpush3.bf16.msra.mxu0 %v2259_v51  ;;  %2040 = vmatprep.subr.bf16.mxu1 %v2290_v1 }
  0x71   : > { %2120 = vmatprep.subr.bf16.mxu0 %v2290_v1 }
  0x73   : > { %2041 = vmatpush3.bf16.msra.mxu1 %v2260_v52 }
  0x74   : > { %2121 = vmatpush3.bf16.msra.mxu0 %v2261_v53  ;;  %2042 = vmatprep.subr.bf16.mxu1 %v2290_v1 }
  0x75   : > { %2122 = vmatprep.subr.bf16.mxu0 %v2290_v1 }
  0x77   : > { %2043 = vmatpush3.bf16.msra.mxu1 %v2262_v54 }
  0x78   : > { %2123 = vmatpush3.bf16.msra.mxu0 %v2263_v55  ;;  %2044 = vmatprep.subr.bf16.mxu1 %v2290_v1 }
  0x79   : > { %2124 = vmatprep.subr.bf16.mxu0 %v2290_v1 }
  0x7b   : > { %2045 = vmatpush3.bf16.msra.mxu1 %v2264_v56 }
  0x7c   : > { %2125 = vmatpush3.bf16.msra.mxu0 %v2265_v12  ;;  %2046 = vmatprep.subr.bf16.mxu1 %v2290_v1 }
  0x7d   : > { %2126 = vmatprep.subr.bf16.mxu0 %v2290_v1 }
  0x7f   : > { %2047 = vmatpush3.bf16.msra.mxu1 %v2266_v57 }
  0x80   : > { %2127 = vmatpush3.bf16.msra.mxu0 %v2267_v58  ;;  %2048 = vmatprep.subr.bf16.mxu1 %v2290_v1 }
  0x81   : > { %2128 = vmatprep.subr.bf16.mxu0 %v2290_v1 }
  0x83   : > { %2049 = vmatpush3.bf16.msra.mxu1 %v2268_v59 }
  0x84   : > { %2129 = vmatpush3.bf16.msra.mxu0 %v2269_v60 }
  0x85   : > { %2134 = vmatprep.subr.bf16.mxu0 %v2290_v1 }
  0x86   : > { %2051 = vmatmul.mubr.bf16.vlgmr.msra.gmra.mrb[0].mxu1 %v738_v7  ;;  %v2279_v7 = vld [vmem:[%s2810_s1 + $0x238] sm:$0xff]  }
  0x87   : > { %2131 = vmatmul.mubr.bf16.vlgmr.msra.gmra.mrb[0].mxu0 %v1336_v38  ;;  %v2277_v38 = vld [vmem:[%s2810_s1 + $0x228] sm:$0xff]  }
  0x88   : > { %2135 = vmatpush3.bf16.msra.mxu0 %v2272_v61  ;;  %2150 = vmatprep.mubr.msk.bf16.mxu0 %vm2291_vm0, %v2290_v1 }
  0x89   : > { %2136 = vmatprep.subr.bf16.mxu0 %v2290_v1 }
  0x8c   : > { %2137 = vmatpush3.bf16.msra.mxu0 %v2273_v47 }
  0x8d   : > { %2138 = vmatprep.subr.bf16.mxu0 %v2290_v1 }
  0x90   : > { %2139 = vmatpush3.bf16.msra.mxu0 %v2274_v49 }
  0x91   : > { %2140 = vmatprep.subr.bf16.mxu0 %v2290_v1 }
  0x94   : > { %2141 = vmatpush3.bf16.msra.mxu0 %v2275_v34 }
  0x95   : > { %2142 = vmatprep.subr.bf16.mxu0 %v2290_v1 }
  0x98   : > { %2143 = vmatpush3.bf16.msra.mxu0 %v2276_v35 }
  0x99   : > { %2144 = vmatprep.subr.bf16.mxu0 %v2290_v1 }
  0x9c   : > { %2145 = vmatpush3.bf16.msra.mxu0 %v2277_v38 }
  0x9d   : > { %2146 = vmatprep.subr.bf16.mxu0 %v2290_v1 }
  0xa0   : > { %2147 = vmatpush3.bf16.msra.mxu0 %v2278_v50 }
  0xa1   : > { %2148 = vmatprep.subr.bf16.mxu0 %v2290_v1  ;;  %v1889_v1 = vld [vmem:[%s2812_s3] ss:$0 sm:$0xff] }
  0xa4   : > { %2149 = vmatpush3.bf16.msra.mxu0 %v2279_v7 }
  0xa7   : > { %2151 = vmatmul.mubr.bf16.vlgmr.msra.gmra.mrb[0].mxu0 %v1484_v26 }
 0x159   : > { %v822_v48 = vpop.f32.mrb[0].mxu1 }
 0x15a   : > { %v2052_v62 = vpop.f32.mrb[1].mxu1 }
 0x15b   : > { %v825_v63 = vpop.f32.mrb[2].mxu1 }
 0x15c   : > { %v2053_v0 = vpop.f32.mrb[3].mxu1 }
 0x17a   : > { %v1568_v2 = vpop.f32.mrb[0].mxu0 }
 0x17b   : > { %v2154_v4 = vadd.f32 %v1568_v2, %v822_v48  ;;  %v2152_v6 = vpop.f32.mrb[1].mxu0 }
 0x17c   : > { %v1571_v8 = vpop.f32.mrb[2].mxu0 }
 0x17d   : > { %v1584_v9 = vmul.f32 %v2154_v4, %v1888_v3  ;;  %v2155_v10 = vadd.f32 %v1571_v8, %v825_v63  ;;  %v2153_v13 = vpop.f32.mrb[3].mxu0 }
 0x17f   : > { %v1593_v14 = vadd.f32 %v1889_v1, %v1584_v9  ;;  %v1585_v15 = vmul.f32 %v2155_v10, %v1888_v3 }
 0x181   : > { %v1595_v42 = vmax.f32 %v1593_v14, 0.0  ;;  %v1594_v16 = vadd.f32 %v1889_v1, %v1585_v15 }
 0x183   : > { %v1599_v17 = vcombine.high %v1595_v42, %v1595_v42  ;;  %v1603_v18 = vpack.c.bf16 %v1595_v42, %v1595_v42  ;;  %v1596_v19 = vmax.f32 %v1594_v16, 0.0 }
 0x185   : > { %v1604_v20 = vpack.c.bf16 %v1599_v17, %v1599_v17  ;;  %1607 = vst [vmem:[%s202_s30] sm:$0x3] %v1603_v18  ;;  %v1600_v21 = vcombine.high %v1596_v19, %v1596_v19  ;;  %v1605_v23 = vpack.c.bf16 %v1596_v19, %v1596_v19 }
 0x187   : > { %1608 = vst [vmem:[%s202_s30 + $0x2] sm:$0x3] %v1604_v20  ;;  %v1606_v5 = vpack.c.bf16 %v1600_v21, %v1600_v21  ;;  %1609 = vst [vmem:[%s202_s30 + $0x4] sm:$0x3] %v1605_v23 }
 0x189   : > { %1610 = vst [vmem:[%s202_s30 + $0x6] sm:$0x3] %v1606_v5 }
 0x18a PF: > { %s14_s15 = sadd.s32 1, %s2288_s15  }
 0x18b   : > { %p11_p5 = scmp.ge.s32.totalorder %s14_s15, 4  }
 0x18d   :  { %13 = sbr.rel (!%p11_p5) target bundleno = 1 (0x1), region = 77 }

</bundles_post_ra>
